<compile_context>
chip_gen: v5e
topology: v5e:2x2
jax: 0.10.0
libtpu: 0.0.40
codegen_flags: <defaults>
</compile_context>

<pallas_src>
import jax
import jax.numpy as jnp
from jax import lax
from jax.experimental import pallas as pl
from jax.experimental.pallas import tpu as pltpu

EPS = 1e-5


def _make_resnet_block_kernel(N, C, H, W):
    """Fused ResnetBlock kernel for fixed (N, C, H, W); NCHW layout, spatial flattened on lanes."""
    HW = H * W
    inv_m = 1.0 / (N * HW)

    def kernel(x_ref, w1_ref, g1_ref, b1_ref, w2_ref, g2_ref, b2_ref, o_ref):
        # Flattened spatial position p = h*W + w for each (C, HW) image slab.
        pos = lax.broadcasted_iota(jnp.int32, (C, HW), 1)
        h_mask = {-1: pos < W, 1: pos >= (H - 1) * W}           # h == 0 / h == H-1
        if (W & (W - 1)) == 0:
            w_in_row = jnp.bitwise_and(pos, W - 1)              # pow-2 fast path (no int div)
        else:
            w_in_row = pos % W
        w_mask = {-1: w_in_row == 0, 1: w_in_row == W - 1}      # w == 0 / w == W-1

        def shift_reflect(v, d, step, masks):
            # t[c, p] = v[c, p + d*step]; at the image border (masks[d]) use the 1-pixel
            # ReflectionPad2d mirror v[c, p - d*step] instead.  Rolls run on the XLU.
            if d == 0:
                return v
            main = pltpu.roll(v, (-d * step) % HW, 1)           # main[p] = v[p + d*step]
            refl = pltpu.roll(v, (d * step) % HW, 1)            # refl[p] = v[p - d*step]
            return jnp.where(masks[d], refl, main)

        def conv3x3(imgs, w_ref):
            # imgs: list of N (C, HW) f32 slabs.  9 rolled taps, each contracted over Cin with a
            # tiny (Cout, Cin) @ (Cin, HW) dot; no im2col buffer, no padded intermediate.
            outs = [jnp.zeros((C, HW), jnp.float32) for _ in range(N)]
            t = 0
            for dy in (-1, 0, 1):
                rows = [shift_reflect(v, dy, W, h_mask) for v in imgs]
                for dx in (-1, 0, 1):
                    wt = w_ref[t]                                # (Cout, Cin)
                    for n in range(N):
                        tap = shift_reflect(rows[n], dx, 1, w_mask)   # (Cin, HW)
                        outs[n] = outs[n] + jnp.dot(
                            wt, tap, preferred_element_type=jnp.float32)
                    t += 1
            return outs

        def batchnorm(acts, g_ref, b_ref, relu):
            # Training-mode BN: biased batch stats per channel over all N*HW positions,
            # single pass (sum / sum-of-squares), folded into one per-channel (scale, shift) FMA.
            s = jnp.sum(acts[0], axis=1, keepdims=True)
            ss = jnp.sum(acts[0] * acts[0], axis=1, keepdims=True)
            for a in acts[1:]:
                s = s + jnp.sum(a, axis=1, keepdims=True)
                ss = ss + jnp.sum(a * a, axis=1, keepdims=True)
            mean = s * inv_m                                     # (C, 1)
            var = ss * inv_m - mean * mean
            scale = g_ref[...] * lax.rsqrt(var + EPS)            # gamma * rsqrt folded
            shift = b_ref[...] - mean * scale                    # beta - mean*scale folded
            if relu:
                return [jnp.maximum(a * scale + shift, 0.0) for a in acts]
            return [a * scale + shift for a in acts]

        xs = [x_ref[n] for n in range(N)]                        # N x (C, HW) f32
        h1 = batchnorm(conv3x3(xs, w1_ref), g1_ref, b1_ref, relu=True)
        ys = batchnorm(conv3x3(h1, w2_ref), g2_ref, b2_ref, relu=False)
        for n in range(N):                                       # residual add + lane-dense store
            o_ref[n] = (xs[n] + ys[n]).astype(o_ref.dtype)

    return kernel


def resnet_block_forward(x_nchw, params):
    """Forward pass of ResnetBlock.  x_nchw: (N, C, H, W); conv weights in HWIO (3,3,Cin,Cout)."""
    w1, g1, b1, w2, g2, b2 = params
    N, C, H, W = x_nchw.shape
    HW = H * W

    # Model-native layout: only contiguous reshapes (free views) at the boundary.
    x = x_nchw.astype(jnp.float32).reshape(N, C, HW)

    # Weights: HWIO (3,3,Cin,Cout) -> (9, Cout, Cin), tap order t = ky*3 + kx (tiny, one-time).
    prep_w = lambda w: jnp.transpose(w.astype(jnp.float32), (0, 1, 3, 2)).reshape(9, C, C)
    prep_v = lambda v: v.astype(jnp.float32).reshape(C, 1)

    vmem = pl.BlockSpec(memory_space=pltpu.MemorySpace.VMEM)
    kernel = _make_resnet_block_kernel(N, C, H, W)

    out = pl.pallas_call(
        kernel,
        out_shape=jax.ShapeDtypeStruct((N, C, HW), jnp.float32),
        in_specs=[vmem] * 7,
        out_specs=vmem,
        compiler_params=pltpu.CompilerParams(vmem_limit_bytes=4 * 1024 * 1024),
    )(x, prep_w(w1), prep_v(g1), prep_v(b1), prep_w(w2), prep_v(g2), prep_v(b2))

    return out.reshape(N, C, H, W)


resnet_block_forward = jax.jit(resnet_block_forward)


def _ref_forward(x_nchw, params):
    """Plain-JAX (XLA) reference of the same forward, for the correctness check."""
    w1, g1, b1, w2, g2, b2 = params

    def conv_bn(x, w, g, b):
        xp = jnp.pad(x, ((0, 0), (0, 0), (1, 1), (1, 1)), mode="reflect")
        w_oihw = jnp.transpose(w, (3, 2, 0, 1))
        y = jax.lax.conv_general_dilated(
            xp, w_oihw, (1, 1), "VALID",
            dimension_numbers=("NCHW", "OIHW", "NCHW"))
        mean = jnp.mean(y, axis=(0, 2, 3), keepdims=True)
        var = jnp.mean((y - mean) ** 2, axis=(0, 2, 3), keepdims=True)
        yn = (y - mean) * jax.lax.rsqrt(var + EPS)
        return yn * g.reshape(1, -1, 1, 1) + b.reshape(1, -1, 1, 1)

    h = jax.nn.relu(conv_bn(x_nchw, w1, g1, b1))
    return x_nchw + conv_bn(h, w2, g2, b2)


if __name__ == "__main__":
    key = jax.random.PRNGKey(0)
    k_x, k_w1, k_w2 = jax.random.split(key, 3)

    N, C, H, W = 2, 4, 16, 16  # dim = 4
    x = jax.random.normal(k_x, (N, C, H, W), jnp.float32)

    # Conv weights in HWIO layout (3, 3, Cin, Cout); use_bias=False so no conv bias.
    w1 = jax.random.normal(k_w1, (3, 3, C, C), jnp.float32) * 0.1
    w2 = jax.random.normal(k_w2, (3, 3, C, C), jnp.float32) * 0.1
    # BatchNorm affine params at PyTorch defaults: gamma=1, beta=0.
    g1 = jnp.ones((C,), jnp.float32)
    b1 = jnp.zeros((C,), jnp.float32)
    g2 = jnp.ones((C,), jnp.float32)
    b2 = jnp.zeros((C,), jnp.float32)
    params = (w1, g1, b1, w2, g2, b2)

    out = jax.block_until_ready(resnet_block_forward(x, params))
    ref = jax.block_until_ready(_ref_forward(x, params))

    assert out.shape == (N, C, H, W)
    max_err = float(jnp.max(jnp.abs(out - ref)))
    assert jnp.allclose(out, ref, rtol=1e-4, atol=1e-4), f"max abs err = {max_err}"
    print("KERNEL_OK")
</pallas_src>

<mosaic_0001>
module attributes {stable_mosaic.version = 11 : i64} {
  func.func @kernel(%arg0: memref<2x4x256xf32, #tpu.memory_space<vmem>>, %arg1: memref<9x4x4xf32, #tpu.memory_space<vmem>>, %arg2: memref<4x1xf32, #tpu.memory_space<vmem>>, %arg3: memref<4x1xf32, #tpu.memory_space<vmem>>, %arg4: memref<9x4x4xf32, #tpu.memory_space<vmem>>, %arg5: memref<4x1xf32, #tpu.memory_space<vmem>>, %arg6: memref<4x1xf32, #tpu.memory_space<vmem>>, %arg7: memref<2x4x256xf32, #tpu.memory_space<vmem>>) attributes {dimension_semantics = [], scalar_prefetch = 0 : i64, scratch_operands = 0 : i64, tpu.core_type = #tpu.core_type<tc>} {
    %0 = tpu.iota {dimensions = array<i32: 1>} : vector<4x256xi32>
    %c16_i32 = arith.constant 16 : i32
    %1 = vector.broadcast %c16_i32 : i32 to vector<4x256xi32>
    %2 = arith.cmpi slt, %0, %1 : vector<4x256xi32>
    %c240_i32 = arith.constant 240 : i32
    %3 = vector.broadcast %c240_i32 : i32 to vector<4x256xi32>
    %4 = arith.cmpi sge, %0, %3 : vector<4x256xi32>
    %c15_i32 = arith.constant 15 : i32
    %5 = vector.broadcast %c15_i32 : i32 to vector<4x256xi32>
    %6 = arith.andi %0, %5 : vector<4x256xi32>
    %c0_i32 = arith.constant 0 : i32
    %7 = vector.broadcast %c0_i32 : i32 to vector<4x256xi32>
    %8 = arith.cmpi eq, %6, %7 : vector<4x256xi32>
    %c15_i32_0 = arith.constant 15 : i32
    %9 = vector.broadcast %c15_i32_0 : i32 to vector<4x256xi32>
    %10 = arith.cmpi eq, %6, %9 : vector<4x256xi32>
    %c0 = arith.constant 0 : index
    %c0_1 = arith.constant 0 : index
    %c0_2 = arith.constant 0 : index
    %11 = vector.load %arg0[%c0, %c0_1, %c0_2] : memref<2x4x256xf32, #tpu.memory_space<vmem>>, vector<1x4x256xf32>
    %12 = vector.shape_cast %11 : vector<1x4x256xf32> to vector<4x256xf32>
    %c1 = arith.constant 1 : index
    %c0_3 = arith.constant 0 : index
    %c0_4 = arith.constant 0 : index
    %13 = vector.load %arg0[%c1, %c0_3, %c0_4] : memref<2x4x256xf32, #tpu.memory_space<vmem>>, vector<1x4x256xf32>
    %14 = vector.shape_cast %13 : vector<1x4x256xf32> to vector<4x256xf32>
    %cst = arith.constant 0.000000e+00 : f32
    %15 = vector.broadcast %cst : f32 to vector<4x256xf32>
    %cst_5 = arith.constant 0.000000e+00 : f32
    %16 = vector.broadcast %cst_5 : f32 to vector<4x256xf32>
    %c16_i32_6 = arith.constant 16 : i32
    %17 = tpu.dynamic_rotate %12 by %c16_i32_6 dim 1 : vector<4x256xf32>, i32 -> vector<4x256xf32>
    %c240_i32_7 = arith.constant 240 : i32
    %18 = tpu.dynamic_rotate %12 by %c240_i32_7 dim 1 : vector<4x256xf32>, i32 -> vector<4x256xf32>
    %19 = arith.select %2, %18, %17 : vector<4x256xi1>, vector<4x256xf32>
    %c16_i32_8 = arith.constant 16 : i32
    %20 = tpu.dynamic_rotate %14 by %c16_i32_8 dim 1 : vector<4x256xf32>, i32 -> vector<4x256xf32>
    %c240_i32_9 = arith.constant 240 : i32
    %21 = tpu.dynamic_rotate %14 by %c240_i32_9 dim 1 : vector<4x256xf32>, i32 -> vector<4x256xf32>
    %22 = arith.select %2, %21, %20 : vector<4x256xi1>, vector<4x256xf32>
    %c0_10 = arith.constant 0 : index
    %c0_11 = arith.constant 0 : index
    %c0_12 = arith.constant 0 : index
    %23 = vector.load %arg1[%c0_10, %c0_11, %c0_12] : memref<9x4x4xf32, #tpu.memory_space<vmem>>, vector<1x4x4xf32>
    %24 = vector.shape_cast %23 : vector<1x4x4xf32> to vector<4x4xf32>
    %c1_i32 = arith.constant 1 : i32
    %25 = tpu.dynamic_rotate %19 by %c1_i32 dim 1 : vector<4x256xf32>, i32 -> vector<4x256xf32>
    %c255_i32 = arith.constant 255 : i32
    %26 = tpu.dynamic_rotate %19 by %c255_i32 dim 1 : vector<4x256xf32>, i32 -> vector<4x256xf32>
    %27 = arith.select %8, %26, %25 : vector<4x256xi1>, vector<4x256xf32>
    %cst_13 = arith.constant dense<0.000000e+00> : vector<4x256xf32>
    %28 = tpu.matmul %24, %27, %cst_13 {dimension_numbers = #tpu.dot_dimension_numbers<[1], [0], [0], [1], [0, 0, 1, 1], [], []>} : vector<4x4xf32>, vector<4x256xf32>, vector<4x256xf32> -> vector<4x256xf32>
    %29 = arith.addf %15, %28 : vector<4x256xf32>
    %c1_i32_14 = arith.constant 1 : i32
    %30 = tpu.dynamic_rotate %22 by %c1_i32_14 dim 1 : vector<4x256xf32>, i32 -> vector<4x256xf32>
    %c255_i32_15 = arith.constant 255 : i32
    %31 = tpu.dynamic_rotate %22 by %c255_i32_15 dim 1 : vector<4x256xf32>, i32 -> vector<4x256xf32>
    %32 = arith.select %8, %31, %30 : vector<4x256xi1>, vector<4x256xf32>
    %cst_16 = arith.constant dense<0.000000e+00> : vector<4x256xf32>
    %33 = tpu.matmul %24, %32, %cst_16 {dimension_numbers = #tpu.dot_dimension_numbers<[1], [0], [0], [1], [0, 0, 1, 1], [], []>} : vector<4x4xf32>, vector<4x256xf32>, vector<4x256xf32> -> vector<4x256xf32>
    %34 = arith.addf %16, %33 : vector<4x256xf32>
    %c1_17 = arith.constant 1 : index
    %c0_18 = arith.constant 0 : index
    %c0_19 = arith.constant 0 : index
    %35 = vector.load %arg1[%c1_17, %c0_18, %c0_19] : memref<9x4x4xf32, #tpu.memory_space<vmem>>, vector<1x4x4xf32>
    %36 = vector.shape_cast %35 : vector<1x4x4xf32> to vector<4x4xf32>
    %cst_20 = arith.constant dense<0.000000e+00> : vector<4x256xf32>
    %37 = tpu.matmul %36, %19, %cst_20 {dimension_numbers = #tpu.dot_dimension_numbers<[1], [0], [0], [1], [0, 0, 1, 1], [], []>} : vector<4x4xf32>, vector<4x256xf32>, vector<4x256xf32> -> vector<4x256xf32>
    %38 = arith.addf %29, %37 : vector<4x256xf32>
    %cst_21 = arith.constant dense<0.000000e+00> : vector<4x256xf32>
    %39 = tpu.matmul %36, %22, %cst_21 {dimension_numbers = #tpu.dot_dimension_numbers<[1], [0], [0], [1], [0, 0, 1, 1], [], []>} : vector<4x4xf32>, vector<4x256xf32>, vector<4x256xf32> -> vector<4x256xf32>
    %40 = arith.addf %34, %39 : vector<4x256xf32>
    %c2 = arith.constant 2 : index
    %c0_22 = arith.constant 0 : index
    %c0_23 = arith.constant 0 : index
    %41 = vector.load %arg1[%c2, %c0_22, %c0_23] : memref<9x4x4xf32, #tpu.memory_space<vmem>>, vector<1x4x4xf32>
    %42 = vector.shape_cast %41 : vector<1x4x4xf32> to vector<4x4xf32>
    %c255_i32_24 = arith.constant 255 : i32
    %43 = tpu.dynamic_rotate %19 by %c255_i32_24 dim 1 : vector<4x256xf32>, i32 -> vector<4x256xf32>
    %c1_i32_25 = arith.constant 1 : i32
    %44 = tpu.dynamic_rotate %19 by %c1_i32_25 dim 1 : vector<4x256xf32>, i32 -> vector<4x256xf32>
    %45 = arith.select %10, %44, %43 : vector<4x256xi1>, vector<4x256xf32>
    %cst_26 = arith.constant dense<0.000000e+00> : vector<4x256xf32>
    %46 = tpu.matmul %42, %45, %cst_26 {dimension_numbers = #tpu.dot_dimension_numbers<[1], [0], [0], [1], [0, 0, 1, 1], [], []>} : vector<4x4xf32>, vector<4x256xf32>, vector<4x256xf32> -> vector<4x256xf32>
    %47 = arith.addf %38, %46 : vector<4x256xf32>
    %c255_i32_27 = arith.constant 255 : i32
    %48 = tpu.dynamic_rotate %22 by %c255_i32_27 dim 1 : vector<4x256xf32>, i32 -> vector<4x256xf32>
    %c1_i32_28 = arith.constant 1 : i32
    %49 = tpu.dynamic_rotate %22 by %c1_i32_28 dim 1 : vector<4x256xf32>, i32 -> vector<4x256xf32>
    %50 = arith.select %10, %49, %48 : vector<4x256xi1>, vector<4x256xf32>
    %cst_29 = arith.constant dense<0.000000e+00> : vector<4x256xf32>
    %51 = tpu.matmul %42, %50, %cst_29 {dimension_numbers = #tpu.dot_dimension_numbers<[1], [0], [0], [1], [0, 0, 1, 1], [], []>} : vector<4x4xf32>, vector<4x256xf32>, vector<4x256xf32> -> vector<4x256xf32>
    %52 = arith.addf %40, %51 : vector<4x256xf32>
    %c3 = arith.constant 3 : index
    %c0_30 = arith.constant 0 : index
    %c0_31 = arith.constant 0 : index
    %53 = vector.load %arg1[%c3, %c0_30, %c0_31] : memref<9x4x4xf32, #tpu.memory_space<vmem>>, vector<1x4x4xf32>
    %54 = vector.shape_cast %53 : vector<1x4x4xf32> to vector<4x4xf32>
    %c1_i32_32 = arith.constant 1 : i32
    %55 = tpu.dynamic_rotate %12 by %c1_i32_32 dim 1 : vector<4x256xf32>, i32 -> vector<4x256xf32>
    %c255_i32_33 = arith.constant 255 : i32
    %56 = tpu.dynamic_rotate %12 by %c255_i32_33 dim 1 : vector<4x256xf32>, i32 -> vector<4x256xf32>
    %57 = arith.select %8, %56, %55 : vector<4x256xi1>, vector<4x256xf32>
    %cst_34 = arith.constant dense<0.000000e+00> : vector<4x256xf32>
    %58 = tpu.matmul %54, %57, %cst_34 {dimension_numbers = #tpu.dot_dimension_numbers<[1], [0], [0], [1], [0, 0, 1, 1], [], []>} : vector<4x4xf32>, vector<4x256xf32>, vector<4x256xf32> -> vector<4x256xf32>
    %59 = arith.addf %47, %58 : vector<4x256xf32>
    %c1_i32_35 = arith.constant 1 : i32
    %60 = tpu.dynamic_rotate %14 by %c1_i32_35 dim 1 : vector<4x256xf32>, i32 -> vector<4x256xf32>
    %c255_i32_36 = arith.constant 255 : i32
    %61 = tpu.dynamic_rotate %14 by %c255_i32_36 dim 1 : vector<4x256xf32>, i32 -> vector<4x256xf32>
    %62 = arith.select %8, %61, %60 : vector<4x256xi1>, vector<4x256xf32>
    %cst_37 = arith.constant dense<0.000000e+00> : vector<4x256xf32>
    %63 = tpu.matmul %54, %62, %cst_37 {dimension_numbers = #tpu.dot_dimension_numbers<[1], [0], [0], [1], [0, 0, 1, 1], [], []>} : vector<4x4xf32>, vector<4x256xf32>, vector<4x256xf32> -> vector<4x256xf32>
    %64 = arith.addf %52, %63 : vector<4x256xf32>
    %c4 = arith.constant 4 : index
    %c0_38 = arith.constant 0 : index
    %c0_39 = arith.constant 0 : index
    %65 = vector.load %arg1[%c4, %c0_38, %c0_39] : memref<9x4x4xf32, #tpu.memory_space<vmem>>, vector<1x4x4xf32>
    %66 = vector.shape_cast %65 : vector<1x4x4xf32> to vector<4x4xf32>
    %cst_40 = arith.constant dense<0.000000e+00> : vector<4x256xf32>
    %67 = tpu.matmul %66, %12, %cst_40 {dimension_numbers = #tpu.dot_dimension_numbers<[1], [0], [0], [1], [0, 0, 1, 1], [], []>} : vector<4x4xf32>, vector<4x256xf32>, vector<4x256xf32> -> vector<4x256xf32>
    %68 = arith.addf %59, %67 : vector<4x256xf32>
    %cst_41 = arith.constant dense<0.000000e+00> : vector<4x256xf32>
    %69 = tpu.matmul %66, %14, %cst_41 {dimension_numbers = #tpu.dot_dimension_numbers<[1], [0], [0], [1], [0, 0, 1, 1], [], []>} : vector<4x4xf32>, vector<4x256xf32>, vector<4x256xf32> -> vector<4x256xf32>
    %70 = arith.addf %64, %69 : vector<4x256xf32>
    %c5 = arith.constant 5 : index
    %c0_42 = arith.constant 0 : index
    %c0_43 = arith.constant 0 : index
    %71 = vector.load %arg1[%c5, %c0_42, %c0_43] : memref<9x4x4xf32, #tpu.memory_space<vmem>>, vector<1x4x4xf32>
    %72 = vector.shape_cast %71 : vector<1x4x4xf32> to vector<4x4xf32>
    %c255_i32_44 = arith.constant 255 : i32
    %73 = tpu.dynamic_rotate %12 by %c255_i32_44 dim 1 : vector<4x256xf32>, i32 -> vector<4x256xf32>
    %c1_i32_45 = arith.constant 1 : i32
    %74 = tpu.dynamic_rotate %12 by %c1_i32_45 dim 1 : vector<4x256xf32>, i32 -> vector<4x256xf32>
    %75 = arith.select %10, %74, %73 : vector<4x256xi1>, vector<4x256xf32>
    %cst_46 = arith.constant dense<0.000000e+00> : vector<4x256xf32>
    %76 = tpu.matmul %72, %75, %cst_46 {dimension_numbers = #tpu.dot_dimension_numbers<[1], [0], [0], [1], [0, 0, 1, 1], [], []>} : vector<4x4xf32>, vector<4x256xf32>, vector<4x256xf32> -> vector<4x256xf32>
    %77 = arith.addf %68, %76 : vector<4x256xf32>
    %c255_i32_47 = arith.constant 255 : i32
    %78 = tpu.dynamic_rotate %14 by %c255_i32_47 dim 1 : vector<4x256xf32>, i32 -> vector<4x256xf32>
    %c1_i32_48 = arith.constant 1 : i32
    %79 = tpu.dynamic_rotate %14 by %c1_i32_48 dim 1 : vector<4x256xf32>, i32 -> vector<4x256xf32>
    %80 = arith.select %10, %79, %78 : vector<4x256xi1>, vector<4x256xf32>
    %cst_49 = arith.constant dense<0.000000e+00> : vector<4x256xf32>
    %81 = tpu.matmul %72, %80, %cst_49 {dimension_numbers = #tpu.dot_dimension_numbers<[1], [0], [0], [1], [0, 0, 1, 1], [], []>} : vector<4x4xf32>, vector<4x256xf32>, vector<4x256xf32> -> vector<4x256xf32>
    %82 = arith.addf %70, %81 : vector<4x256xf32>
    %c240_i32_50 = arith.constant 240 : i32
    %83 = tpu.dynamic_rotate %12 by %c240_i32_50 dim 1 : vector<4x256xf32>, i32 -> vector<4x256xf32>
    %c16_i32_51 = arith.constant 16 : i32
    %84 = tpu.dynamic_rotate %12 by %c16_i32_51 dim 1 : vector<4x256xf32>, i32 -> vector<4x256xf32>
    %85 = arith.select %4, %84, %83 : vector<4x256xi1>, vector<4x256xf32>
    %c240_i32_52 = arith.constant 240 : i32
    %86 = tpu.dynamic_rotate %14 by %c240_i32_52 dim 1 : vector<4x256xf32>, i32 -> vector<4x256xf32>
    %c16_i32_53 = arith.constant 16 : i32
    %87 = tpu.dynamic_rotate %14 by %c16_i32_53 dim 1 : vector<4x256xf32>, i32 -> vector<4x256xf32>
    %88 = arith.select %4, %87, %86 : vector<4x256xi1>, vector<4x256xf32>
    %c6 = arith.constant 6 : index
    %c0_54 = arith.constant 0 : index
    %c0_55 = arith.constant 0 : index
    %89 = vector.load %arg1[%c6, %c0_54, %c0_55] : memref<9x4x4xf32, #tpu.memory_space<vmem>>, vector<1x4x4xf32>
    %90 = vector.shape_cast %89 : vector<1x4x4xf32> to vector<4x4xf32>
    %c1_i32_56 = arith.constant 1 : i32
    %91 = tpu.dynamic_rotate %85 by %c1_i32_56 dim 1 : vector<4x256xf32>, i32 -> vector<4x256xf32>
    %c255_i32_57 = arith.constant 255 : i32
    %92 = tpu.dynamic_rotate %85 by %c255_i32_57 dim 1 : vector<4x256xf32>, i32 -> vector<4x256xf32>
    %93 = arith.select %8, %92, %91 : vector<4x256xi1>, vector<4x256xf32>
    %cst_58 = arith.constant dense<0.000000e+00> : vector<4x256xf32>
    %94 = tpu.matmul %90, %93, %cst_58 {dimension_numbers = #tpu.dot_dimension_numbers<[1], [0], [0], [1], [0, 0, 1, 1], [], []>} : vector<4x4xf32>, vector<4x256xf32>, vector<4x256xf32> -> vector<4x256xf32>
    %95 = arith.addf %77, %94 : vector<4x256xf32>
    %c1_i32_59 = arith.constant 1 : i32
    %96 = tpu.dynamic_rotate %88 by %c1_i32_59 dim 1 : vector<4x256xf32>, i32 -> vector<4x256xf32>
    %c255_i32_60 = arith.constant 255 : i32
    %97 = tpu.dynamic_rotate %88 by %c255_i32_60 dim 1 : vector<4x256xf32>, i32 -> vector<4x256xf32>
    %98 = arith.select %8, %97, %96 : vector<4x256xi1>, vector<4x256xf32>
    %cst_61 = arith.constant dense<0.000000e+00> : vector<4x256xf32>
    %99 = tpu.matmul %90, %98, %cst_61 {dimension_numbers = #tpu.dot_dimension_numbers<[1], [0], [0], [1], [0, 0, 1, 1], [], []>} : vector<4x4xf32>, vector<4x256xf32>, vector<4x256xf32> -> vector<4x256xf32>
    %100 = arith.addf %82, %99 : vector<4x256xf32>
    %c7 = arith.constant 7 : index
    %c0_62 = arith.constant 0 : index
    %c0_63 = arith.constant 0 : index
    %101 = vector.load %arg1[%c7, %c0_62, %c0_63] : memref<9x4x4xf32, #tpu.memory_space<vmem>>, vector<1x4x4xf32>
    %102 = vector.shape_cast %101 : vector<1x4x4xf32> to vector<4x4xf32>
    %cst_64 = arith.constant dense<0.000000e+00> : vector<4x256xf32>
    %103 = tpu.matmul %102, %85, %cst_64 {dimension_numbers = #tpu.dot_dimension_numbers<[1], [0], [0], [1], [0, 0, 1, 1], [], []>} : vector<4x4xf32>, vector<4x256xf32>, vector<4x256xf32> -> vector<4x256xf32>
    %104 = arith.addf %95, %103 : vector<4x256xf32>
    %cst_65 = arith.constant dense<0.000000e+00> : vector<4x256xf32>
    %105 = tpu.matmul %102, %88, %cst_65 {dimension_numbers = #tpu.dot_dimension_numbers<[1], [0], [0], [1], [0, 0, 1, 1], [], []>} : vector<4x4xf32>, vector<4x256xf32>, vector<4x256xf32> -> vector<4x256xf32>
    %106 = arith.addf %100, %105 : vector<4x256xf32>
    %c8 = arith.constant 8 : index
    %c0_66 = arith.constant 0 : index
    %c0_67 = arith.constant 0 : index
    %107 = vector.load %arg1[%c8, %c0_66, %c0_67] : memref<9x4x4xf32, #tpu.memory_space<vmem>>, vector<1x4x4xf32>
    %108 = vector.shape_cast %107 : vector<1x4x4xf32> to vector<4x4xf32>
    %c255_i32_68 = arith.constant 255 : i32
    %109 = tpu.dynamic_rotate %85 by %c255_i32_68 dim 1 : vector<4x256xf32>, i32 -> vector<4x256xf32>
    %c1_i32_69 = arith.constant 1 : i32
    %110 = tpu.dynamic_rotate %85 by %c1_i32_69 dim 1 : vector<4x256xf32>, i32 -> vector<4x256xf32>
    %111 = arith.select %10, %110, %109 : vector<4x256xi1>, vector<4x256xf32>
    %cst_70 = arith.constant dense<0.000000e+00> : vector<4x256xf32>
    %112 = tpu.matmul %108, %111, %cst_70 {dimension_numbers = #tpu.dot_dimension_numbers<[1], [0], [0], [1], [0, 0, 1, 1], [], []>} : vector<4x4xf32>, vector<4x256xf32>, vector<4x256xf32> -> vector<4x256xf32>
    %113 = arith.addf %104, %112 : vector<4x256xf32>
    %c255_i32_71 = arith.constant 255 : i32
    %114 = tpu.dynamic_rotate %88 by %c255_i32_71 dim 1 : vector<4x256xf32>, i32 -> vector<4x256xf32>
    %c1_i32_72 = arith.constant 1 : i32
    %115 = tpu.dynamic_rotate %88 by %c1_i32_72 dim 1 : vector<4x256xf32>, i32 -> vector<4x256xf32>
    %116 = arith.select %10, %115, %114 : vector<4x256xi1>, vector<4x256xf32>
    %cst_73 = arith.constant dense<0.000000e+00> : vector<4x256xf32>
    %117 = tpu.matmul %108, %116, %cst_73 {dimension_numbers = #tpu.dot_dimension_numbers<[1], [0], [0], [1], [0, 0, 1, 1], [], []>} : vector<4x4xf32>, vector<4x256xf32>, vector<4x256xf32> -> vector<4x256xf32>
    %118 = arith.addf %106, %117 : vector<4x256xf32>
    %cst_74 = arith.constant dense<0.000000e+00> : vector<4xf32>
    %119 = vector.multi_reduction <add>, %113, %cst_74 [1] : vector<4x256xf32> to vector<4xf32>
    %120 = vector.shape_cast %119 : vector<4xf32> to vector<4x1xf32>
    %121 = arith.mulf %113, %113 : vector<4x256xf32>
    %cst_75 = arith.constant dense<0.000000e+00> : vector<4xf32>
    %122 = vector.multi_reduction <add>, %121, %cst_75 [1] : vector<4x256xf32> to vector<4xf32>
    %123 = vector.shape_cast %122 : vector<4xf32> to vector<4x1xf32>
    %cst_76 = arith.constant dense<0.000000e+00> : vector<4xf32>
    %124 = vector.multi_reduction <add>, %118, %cst_76 [1] : vector<4x256xf32> to vector<4xf32>
    %125 = vector.shape_cast %124 : vector<4xf32> to vector<4x1xf32>
    %126 = arith.addf %120, %125 : vector<4x1xf32>
    %127 = arith.mulf %118, %118 : vector<4x256xf32>
    %cst_77 = arith.constant dense<0.000000e+00> : vector<4xf32>
    %128 = vector.multi_reduction <add>, %127, %cst_77 [1] : vector<4x256xf32> to vector<4xf32>
    %129 = vector.shape_cast %128 : vector<4xf32> to vector<4x1xf32>
    %130 = arith.addf %123, %129 : vector<4x1xf32>
    %cst_78 = arith.constant 0.001953125 : f32
    %131 = vector.broadcast %cst_78 : f32 to vector<4x1xf32>
    %132 = arith.mulf %126, %131 : vector<4x1xf32>
    %cst_79 = arith.constant 0.001953125 : f32
    %133 = vector.broadcast %cst_79 : f32 to vector<4x1xf32>
    %134 = arith.mulf %130, %133 : vector<4x1xf32>
    %135 = arith.mulf %132, %132 : vector<4x1xf32>
    %136 = arith.subf %134, %135 : vector<4x1xf32>
    %c0_80 = arith.constant 0 : index
    %c0_81 = arith.constant 0 : index
    %137 = vector.load %arg2[%c0_80, %c0_81] : memref<4x1xf32, #tpu.memory_space<vmem>>, vector<4x1xf32>
    %cst_82 = arith.constant 9.99999974E-6 : f32
    %138 = vector.broadcast %cst_82 : f32 to vector<4x1xf32>
    %139 = arith.addf %136, %138 : vector<4x1xf32>
    %140 = math.rsqrt %139 : vector<4x1xf32>
    %141 = arith.mulf %137, %140 : vector<4x1xf32>
    %c0_83 = arith.constant 0 : index
    %c0_84 = arith.constant 0 : index
    %142 = vector.load %arg3[%c0_83, %c0_84] : memref<4x1xf32, #tpu.memory_space<vmem>>, vector<4x1xf32>
    %143 = arith.mulf %132, %141 : vector<4x1xf32>
    %144 = arith.subf %142, %143 : vector<4x1xf32>
    %145 = vector.broadcast %141 : vector<4x1xf32> to vector<4x256xf32>
    %146 = arith.mulf %113, %145 : vector<4x256xf32>
    %147 = vector.broadcast %144 : vector<4x1xf32> to vector<4x256xf32>
    %148 = arith.addf %146, %147 : vector<4x256xf32>
    %cst_85 = arith.constant 0.000000e+00 : f32
    %149 = vector.broadcast %cst_85 : f32 to vector<4x256xf32>
    %150 = arith.maximumf %148, %149 : vector<4x256xf32>
    %151 = vector.broadcast %141 : vector<4x1xf32> to vector<4x256xf32>
    %152 = arith.mulf %118, %151 : vector<4x256xf32>
    %153 = vector.broadcast %144 : vector<4x1xf32> to vector<4x256xf32>
    %154 = arith.addf %152, %153 : vector<4x256xf32>
    %cst_86 = arith.constant 0.000000e+00 : f32
    %155 = vector.broadcast %cst_86 : f32 to vector<4x256xf32>
    %156 = arith.maximumf %154, %155 : vector<4x256xf32>
    %cst_87 = arith.constant 0.000000e+00 : f32
    %157 = vector.broadcast %cst_87 : f32 to vector<4x256xf32>
    %cst_88 = arith.constant 0.000000e+00 : f32
    %158 = vector.broadcast %cst_88 : f32 to vector<4x256xf32>
    %c16_i32_89 = arith.constant 16 : i32
    %159 = tpu.dynamic_rotate %150 by %c16_i32_89 dim 1 : vector<4x256xf32>, i32 -> vector<4x256xf32>
    %c240_i32_90 = arith.constant 240 : i32
    %160 = tpu.dynamic_rotate %150 by %c240_i32_90 dim 1 : vector<4x256xf32>, i32 -> vector<4x256xf32>
    %161 = arith.select %2, %160, %159 : vector<4x256xi1>, vector<4x256xf32>
    %c16_i32_91 = arith.constant 16 : i32
    %162 = tpu.dynamic_rotate %156 by %c16_i32_91 dim 1 : vector<4x256xf32>, i32 -> vector<4x256xf32>
    %c240_i32_92 = arith.constant 240 : i32
    %163 = tpu.dynamic_rotate %156 by %c240_i32_92 dim 1 : vector<4x256xf32>, i32 -> vector<4x256xf32>
    %164 = arith.select %2, %163, %162 : vector<4x256xi1>, vector<4x256xf32>
    %c0_93 = arith.constant 0 : index
    %c0_94 = arith.constant 0 : index
    %c0_95 = arith.constant 0 : index
    %165 = vector.load %arg4[%c0_93, %c0_94, %c0_95] : memref<9x4x4xf32, #tpu.memory_space<vmem>>, vector<1x4x4xf32>
    %166 = vector.shape_cast %165 : vector<1x4x4xf32> to vector<4x4xf32>
    %c1_i32_96 = arith.constant 1 : i32
    %167 = tpu.dynamic_rotate %161 by %c1_i32_96 dim 1 : vector<4x256xf32>, i32 -> vector<4x256xf32>
    %c255_i32_97 = arith.constant 255 : i32
    %168 = tpu.dynamic_rotate %161 by %c255_i32_97 dim 1 : vector<4x256xf32>, i32 -> vector<4x256xf32>
    %169 = arith.select %8, %168, %167 : vector<4x256xi1>, vector<4x256xf32>
    %cst_98 = arith.constant dense<0.000000e+00> : vector<4x256xf32>
    %170 = tpu.matmul %166, %169, %cst_98 {dimension_numbers = #tpu.dot_dimension_numbers<[1], [0], [0], [1], [0, 0, 1, 1], [], []>} : vector<4x4xf32>, vector<4x256xf32>, vector<4x256xf32> -> vector<4x256xf32>
    %171 = arith.addf %157, %170 : vector<4x256xf32>
    %c1_i32_99 = arith.constant 1 : i32
    %172 = tpu.dynamic_rotate %164 by %c1_i32_99 dim 1 : vector<4x256xf32>, i32 -> vector<4x256xf32>
    %c255_i32_100 = arith.constant 255 : i32
    %173 = tpu.dynamic_rotate %164 by %c255_i32_100 dim 1 : vector<4x256xf32>, i32 -> vector<4x256xf32>
    %174 = arith.select %8, %173, %172 : vector<4x256xi1>, vector<4x256xf32>
    %cst_101 = arith.constant dense<0.000000e+00> : vector<4x256xf32>
    %175 = tpu.matmul %166, %174, %cst_101 {dimension_numbers = #tpu.dot_dimension_numbers<[1], [0], [0], [1], [0, 0, 1, 1], [], []>} : vector<4x4xf32>, vector<4x256xf32>, vector<4x256xf32> -> vector<4x256xf32>
    %176 = arith.addf %158, %175 : vector<4x256xf32>
    %c1_102 = arith.constant 1 : index
    %c0_103 = arith.constant 0 : index
    %c0_104 = arith.constant 0 : index
    %177 = vector.load %arg4[%c1_102, %c0_103, %c0_104] : memref<9x4x4xf32, #tpu.memory_space<vmem>>, vector<1x4x4xf32>
    %178 = vector.shape_cast %177 : vector<1x4x4xf32> to vector<4x4xf32>
    %cst_105 = arith.constant dense<0.000000e+00> : vector<4x256xf32>
    %179 = tpu.matmul %178, %161, %cst_105 {dimension_numbers = #tpu.dot_dimension_numbers<[1], [0], [0], [1], [0, 0, 1, 1], [], []>} : vector<4x4xf32>, vector<4x256xf32>, vector<4x256xf32> -> vector<4x256xf32>
    %180 = arith.addf %171, %179 : vector<4x256xf32>
    %cst_106 = arith.constant dense<0.000000e+00> : vector<4x256xf32>
    %181 = tpu.matmul %178, %164, %cst_106 {dimension_numbers = #tpu.dot_dimension_numbers<[1], [0], [0], [1], [0, 0, 1, 1], [], []>} : vector<4x4xf32>, vector<4x256xf32>, vector<4x256xf32> -> vector<4x256xf32>
    %182 = arith.addf %176, %181 : vector<4x256xf32>
    %c2_107 = arith.constant 2 : index
    %c0_108 = arith.constant 0 : index
    %c0_109 = arith.constant 0 : index
    %183 = vector.load %arg4[%c2_107, %c0_108, %c0_109] : memref<9x4x4xf32, #tpu.memory_space<vmem>>, vector<1x4x4xf32>
    %184 = vector.shape_cast %183 : vector<1x4x4xf32> to vector<4x4xf32>
    %c255_i32_110 = arith.constant 255 : i32
    %185 = tpu.dynamic_rotate %161 by %c255_i32_110 dim 1 : vector<4x256xf32>, i32 -> vector<4x256xf32>
    %c1_i32_111 = arith.constant 1 : i32
    %186 = tpu.dynamic_rotate %161 by %c1_i32_111 dim 1 : vector<4x256xf32>, i32 -> vector<4x256xf32>
    %187 = arith.select %10, %186, %185 : vector<4x256xi1>, vector<4x256xf32>
    %cst_112 = arith.constant dense<0.000000e+00> : vector<4x256xf32>
    %188 = tpu.matmul %184, %187, %cst_112 {dimension_numbers = #tpu.dot_dimension_numbers<[1], [0], [0], [1], [0, 0, 1, 1], [], []>} : vector<4x4xf32>, vector<4x256xf32>, vector<4x256xf32> -> vector<4x256xf32>
    %189 = arith.addf %180, %188 : vector<4x256xf32>
    %c255_i32_113 = arith.constant 255 : i32
    %190 = tpu.dynamic_rotate %164 by %c255_i32_113 dim 1 : vector<4x256xf32>, i32 -> vector<4x256xf32>
    %c1_i32_114 = arith.constant 1 : i32
    %191 = tpu.dynamic_rotate %164 by %c1_i32_114 dim 1 : vector<4x256xf32>, i32 -> vector<4x256xf32>
    %192 = arith.select %10, %191, %190 : vector<4x256xi1>, vector<4x256xf32>
    %cst_115 = arith.constant dense<0.000000e+00> : vector<4x256xf32>
    %193 = tpu.matmul %184, %192, %cst_115 {dimension_numbers = #tpu.dot_dimension_numbers<[1], [0], [0], [1], [0, 0, 1, 1], [], []>} : vector<4x4xf32>, vector<4x256xf32>, vector<4x256xf32> -> vector<4x256xf32>
    %194 = arith.addf %182, %193 : vector<4x256xf32>
    %c3_116 = arith.constant 3 : index
    %c0_117 = arith.constant 0 : index
    %c0_118 = arith.constant 0 : index
    %195 = vector.load %arg4[%c3_116, %c0_117, %c0_118] : memref<9x4x4xf32, #tpu.memory_space<vmem>>, vector<1x4x4xf32>
    %196 = vector.shape_cast %195 : vector<1x4x4xf32> to vector<4x4xf32>
    %c1_i32_119 = arith.constant 1 : i32
    %197 = tpu.dynamic_rotate %150 by %c1_i32_119 dim 1 : vector<4x256xf32>, i32 -> vector<4x256xf32>
    %c255_i32_120 = arith.constant 255 : i32
    %198 = tpu.dynamic_rotate %150 by %c255_i32_120 dim 1 : vector<4x256xf32>, i32 -> vector<4x256xf32>
    %199 = arith.select %8, %198, %197 : vector<4x256xi1>, vector<4x256xf32>
    %cst_121 = arith.constant dense<0.000000e+00> : vector<4x256xf32>
    %200 = tpu.matmul %196, %199, %cst_121 {dimension_numbers = #tpu.dot_dimension_numbers<[1], [0], [0], [1], [0, 0, 1, 1], [], []>} : vector<4x4xf32>, vector<4x256xf32>, vector<4x256xf32> -> vector<4x256xf32>
    %201 = arith.addf %189, %200 : vector<4x256xf32>
    %c1_i32_122 = arith.constant 1 : i32
    %202 = tpu.dynamic_rotate %156 by %c1_i32_122 dim 1 : vector<4x256xf32>, i32 -> vector<4x256xf32>
    %c255_i32_123 = arith.constant 255 : i32
    %203 = tpu.dynamic_rotate %156 by %c255_i32_123 dim 1 : vector<4x256xf32>, i32 -> vector<4x256xf32>
    %204 = arith.select %8, %203, %202 : vector<4x256xi1>, vector<4x256xf32>
    %cst_124 = arith.constant dense<0.000000e+00> : vector<4x256xf32>
    %205 = tpu.matmul %196, %204, %cst_124 {dimension_numbers = #tpu.dot_dimension_numbers<[1], [0], [0], [1], [0, 0, 1, 1], [], []>} : vector<4x4xf32>, vector<4x256xf32>, vector<4x256xf32> -> vector<4x256xf32>
    %206 = arith.addf %194, %205 : vector<4x256xf32>
    %c4_125 = arith.constant 4 : index
    %c0_126 = arith.constant 0 : index
    %c0_127 = arith.constant 0 : index
    %207 = vector.load %arg4[%c4_125, %c0_126, %c0_127] : memref<9x4x4xf32, #tpu.memory_space<vmem>>, vector<1x4x4xf32>
    %208 = vector.shape_cast %207 : vector<1x4x4xf32> to vector<4x4xf32>
    %cst_128 = arith.constant dense<0.000000e+00> : vector<4x256xf32>
    %209 = tpu.matmul %208, %150, %cst_128 {dimension_numbers = #tpu.dot_dimension_numbers<[1], [0], [0], [1], [0, 0, 1, 1], [], []>} : vector<4x4xf32>, vector<4x256xf32>, vector<4x256xf32> -> vector<4x256xf32>
    %210 = arith.addf %201, %209 : vector<4x256xf32>
    %cst_129 = arith.constant dense<0.000000e+00> : vector<4x256xf32>
    %211 = tpu.matmul %208, %156, %cst_129 {dimension_numbers = #tpu.dot_dimension_numbers<[1], [0], [0], [1], [0, 0, 1, 1], [], []>} : vector<4x4xf32>, vector<4x256xf32>, vector<4x256xf32> -> vector<4x256xf32>
    %212 = arith.addf %206, %211 : vector<4x256xf32>
    %c5_130 = arith.constant 5 : index
    %c0_131 = arith.constant 0 : index
    %c0_132 = arith.constant 0 : index
    %213 = vector.load %arg4[%c5_130, %c0_131, %c0_132] : memref<9x4x4xf32, #tpu.memory_space<vmem>>, vector<1x4x4xf32>
    %214 = vector.shape_cast %213 : vector<1x4x4xf32> to vector<4x4xf32>
    %c255_i32_133 = arith.constant 255 : i32
    %215 = tpu.dynamic_rotate %150 by %c255_i32_133 dim 1 : vector<4x256xf32>, i32 -> vector<4x256xf32>
    %c1_i32_134 = arith.constant 1 : i32
    %216 = tpu.dynamic_rotate %150 by %c1_i32_134 dim 1 : vector<4x256xf32>, i32 -> vector<4x256xf32>
    %217 = arith.select %10, %216, %215 : vector<4x256xi1>, vector<4x256xf32>
    %cst_135 = arith.constant dense<0.000000e+00> : vector<4x256xf32>
    %218 = tpu.matmul %214, %217, %cst_135 {dimension_numbers = #tpu.dot_dimension_numbers<[1], [0], [0], [1], [0, 0, 1, 1], [], []>} : vector<4x4xf32>, vector<4x256xf32>, vector<4x256xf32> -> vector<4x256xf32>
    %219 = arith.addf %210, %218 : vector<4x256xf32>
    %c255_i32_136 = arith.constant 255 : i32
    %220 = tpu.dynamic_rotate %156 by %c255_i32_136 dim 1 : vector<4x256xf32>, i32 -> vector<4x256xf32>
    %c1_i32_137 = arith.constant 1 : i32
    %221 = tpu.dynamic_rotate %156 by %c1_i32_137 dim 1 : vector<4x256xf32>, i32 -> vector<4x256xf32>
    %222 = arith.select %10, %221, %220 : vector<4x256xi1>, vector<4x256xf32>
    %cst_138 = arith.constant dense<0.000000e+00> : vector<4x256xf32>
    %223 = tpu.matmul %214, %222, %cst_138 {dimension_numbers = #tpu.dot_dimension_numbers<[1], [0], [0], [1], [0, 0, 1, 1], [], []>} : vector<4x4xf32>, vector<4x256xf32>, vector<4x256xf32> -> vector<4x256xf32>
    %224 = arith.addf %212, %223 : vector<4x256xf32>
    %c240_i32_139 = arith.constant 240 : i32
    %225 = tpu.dynamic_rotate %150 by %c240_i32_139 dim 1 : vector<4x256xf32>, i32 -> vector<4x256xf32>
    %c16_i32_140 = arith.constant 16 : i32
    %226 = tpu.dynamic_rotate %150 by %c16_i32_140 dim 1 : vector<4x256xf32>, i32 -> vector<4x256xf32>
    %227 = arith.select %4, %226, %225 : vector<4x256xi1>, vector<4x256xf32>
    %c240_i32_141 = arith.constant 240 : i32
    %228 = tpu.dynamic_rotate %156 by %c240_i32_141 dim 1 : vector<4x256xf32>, i32 -> vector<4x256xf32>
    %c16_i32_142 = arith.constant 16 : i32
    %229 = tpu.dynamic_rotate %156 by %c16_i32_142 dim 1 : vector<4x256xf32>, i32 -> vector<4x256xf32>
    %230 = arith.select %4, %229, %228 : vector<4x256xi1>, vector<4x256xf32>
    %c6_143 = arith.constant 6 : index
    %c0_144 = arith.constant 0 : index
    %c0_145 = arith.constant 0 : index
    %231 = vector.load %arg4[%c6_143, %c0_144, %c0_145] : memref<9x4x4xf32, #tpu.memory_space<vmem>>, vector<1x4x4xf32>
    %232 = vector.shape_cast %231 : vector<1x4x4xf32> to vector<4x4xf32>
    %c1_i32_146 = arith.constant 1 : i32
    %233 = tpu.dynamic_rotate %227 by %c1_i32_146 dim 1 : vector<4x256xf32>, i32 -> vector<4x256xf32>
    %c255_i32_147 = arith.constant 255 : i32
    %234 = tpu.dynamic_rotate %227 by %c255_i32_147 dim 1 : vector<4x256xf32>, i32 -> vector<4x256xf32>
    %235 = arith.select %8, %234, %233 : vector<4x256xi1>, vector<4x256xf32>
    %cst_148 = arith.constant dense<0.000000e+00> : vector<4x256xf32>
    %236 = tpu.matmul %232, %235, %cst_148 {dimension_numbers = #tpu.dot_dimension_numbers<[1], [0], [0], [1], [0, 0, 1, 1], [], []>} : vector<4x4xf32>, vector<4x256xf32>, vector<4x256xf32> -> vector<4x256xf32>
    %237 = arith.addf %219, %236 : vector<4x256xf32>
    %c1_i32_149 = arith.constant 1 : i32
    %238 = tpu.dynamic_rotate %230 by %c1_i32_149 dim 1 : vector<4x256xf32>, i32 -> vector<4x256xf32>
    %c255_i32_150 = arith.constant 255 : i32
    %239 = tpu.dynamic_rotate %230 by %c255_i32_150 dim 1 : vector<4x256xf32>, i32 -> vector<4x256xf32>
    %240 = arith.select %8, %239, %238 : vector<4x256xi1>, vector<4x256xf32>
    %cst_151 = arith.constant dense<0.000000e+00> : vector<4x256xf32>
    %241 = tpu.matmul %232, %240, %cst_151 {dimension_numbers = #tpu.dot_dimension_numbers<[1], [0], [0], [1], [0, 0, 1, 1], [], []>} : vector<4x4xf32>, vector<4x256xf32>, vector<4x256xf32> -> vector<4x256xf32>
    %242 = arith.addf %224, %241 : vector<4x256xf32>
    %c7_152 = arith.constant 7 : index
    %c0_153 = arith.constant 0 : index
    %c0_154 = arith.constant 0 : index
    %243 = vector.load %arg4[%c7_152, %c0_153, %c0_154] : memref<9x4x4xf32, #tpu.memory_space<vmem>>, vector<1x4x4xf32>
    %244 = vector.shape_cast %243 : vector<1x4x4xf32> to vector<4x4xf32>
    %cst_155 = arith.constant dense<0.000000e+00> : vector<4x256xf32>
    %245 = tpu.matmul %244, %227, %cst_155 {dimension_numbers = #tpu.dot_dimension_numbers<[1], [0], [0], [1], [0, 0, 1, 1], [], []>} : vector<4x4xf32>, vector<4x256xf32>, vector<4x256xf32> -> vector<4x256xf32>
    %246 = arith.addf %237, %245 : vector<4x256xf32>
    %cst_156 = arith.constant dense<0.000000e+00> : vector<4x256xf32>
    %247 = tpu.matmul %244, %230, %cst_156 {dimension_numbers = #tpu.dot_dimension_numbers<[1], [0], [0], [1], [0, 0, 1, 1], [], []>} : vector<4x4xf32>, vector<4x256xf32>, vector<4x256xf32> -> vector<4x256xf32>
    %248 = arith.addf %242, %247 : vector<4x256xf32>
    %c8_157 = arith.constant 8 : index
    %c0_158 = arith.constant 0 : index
    %c0_159 = arith.constant 0 : index
    %249 = vector.load %arg4[%c8_157, %c0_158, %c0_159] : memref<9x4x4xf32, #tpu.memory_space<vmem>>, vector<1x4x4xf32>
    %250 = vector.shape_cast %249 : vector<1x4x4xf32> to vector<4x4xf32>
    %c255_i32_160 = arith.constant 255 : i32
    %251 = tpu.dynamic_rotate %227 by %c255_i32_160 dim 1 : vector<4x256xf32>, i32 -> vector<4x256xf32>
    %c1_i32_161 = arith.constant 1 : i32
    %252 = tpu.dynamic_rotate %227 by %c1_i32_161 dim 1 : vector<4x256xf32>, i32 -> vector<4x256xf32>
    %253 = arith.select %10, %252, %251 : vector<4x256xi1>, vector<4x256xf32>
    %cst_162 = arith.constant dense<0.000000e+00> : vector<4x256xf32>
    %254 = tpu.matmul %250, %253, %cst_162 {dimension_numbers = #tpu.dot_dimension_numbers<[1], [0], [0], [1], [0, 0, 1, 1], [], []>} : vector<4x4xf32>, vector<4x256xf32>, vector<4x256xf32> -> vector<4x256xf32>
    %255 = arith.addf %246, %254 : vector<4x256xf32>
    %c255_i32_163 = arith.constant 255 : i32
    %256 = tpu.dynamic_rotate %230 by %c255_i32_163 dim 1 : vector<4x256xf32>, i32 -> vector<4x256xf32>
    %c1_i32_164 = arith.constant 1 : i32
    %257 = tpu.dynamic_rotate %230 by %c1_i32_164 dim 1 : vector<4x256xf32>, i32 -> vector<4x256xf32>
    %258 = arith.select %10, %257, %256 : vector<4x256xi1>, vector<4x256xf32>
    %cst_165 = arith.constant dense<0.000000e+00> : vector<4x256xf32>
    %259 = tpu.matmul %250, %258, %cst_165 {dimension_numbers = #tpu.dot_dimension_numbers<[1], [0], [0], [1], [0, 0, 1, 1], [], []>} : vector<4x4xf32>, vector<4x256xf32>, vector<4x256xf32> -> vector<4x256xf32>
    %260 = arith.addf %248, %259 : vector<4x256xf32>
    %cst_166 = arith.constant dense<0.000000e+00> : vector<4xf32>
    %261 = vector.multi_reduction <add>, %255, %cst_166 [1] : vector<4x256xf32> to vector<4xf32>
    %262 = vector.shape_cast %261 : vector<4xf32> to vector<4x1xf32>
    %263 = arith.mulf %255, %255 : vector<4x256xf32>
    %cst_167 = arith.constant dense<0.000000e+00> : vector<4xf32>
    %264 = vector.multi_reduction <add>, %263, %cst_167 [1] : vector<4x256xf32> to vector<4xf32>
    %265 = vector.shape_cast %264 : vector<4xf32> to vector<4x1xf32>
    %cst_168 = arith.constant dense<0.000000e+00> : vector<4xf32>
    %266 = vector.multi_reduction <add>, %260, %cst_168 [1] : vector<4x256xf32> to vector<4xf32>
    %267 = vector.shape_cast %266 : vector<4xf32> to vector<4x1xf32>
    %268 = arith.addf %262, %267 : vector<4x1xf32>
    %269 = arith.mulf %260, %260 : vector<4x256xf32>
    %cst_169 = arith.constant dense<0.000000e+00> : vector<4xf32>
    %270 = vector.multi_reduction <add>, %269, %cst_169 [1] : vector<4x256xf32> to vector<4xf32>
    %271 = vector.shape_cast %270 : vector<4xf32> to vector<4x1xf32>
    %272 = arith.addf %265, %271 : vector<4x1xf32>
    %cst_170 = arith.constant 0.001953125 : f32
    %273 = vector.broadcast %cst_170 : f32 to vector<4x1xf32>
    %274 = arith.mulf %268, %273 : vector<4x1xf32>
    %cst_171 = arith.constant 0.001953125 : f32
    %275 = vector.broadcast %cst_171 : f32 to vector<4x1xf32>
    %276 = arith.mulf %272, %275 : vector<4x1xf32>
    %277 = arith.mulf %274, %274 : vector<4x1xf32>
    %278 = arith.subf %276, %277 : vector<4x1xf32>
    %c0_172 = arith.constant 0 : index
    %c0_173 = arith.constant 0 : index
    %279 = vector.load %arg5[%c0_172, %c0_173] : memref<4x1xf32, #tpu.memory_space<vmem>>, vector<4x1xf32>
    %cst_174 = arith.constant 9.99999974E-6 : f32
    %280 = vector.broadcast %cst_174 : f32 to vector<4x1xf32>
    %281 = arith.addf %278, %280 : vector<4x1xf32>
    %282 = math.rsqrt %281 : vector<4x1xf32>
    %283 = arith.mulf %279, %282 : vector<4x1xf32>
    %c0_175 = arith.constant 0 : index
    %c0_176 = arith.constant 0 : index
    %284 = vector.load %arg6[%c0_175, %c0_176] : memref<4x1xf32, #tpu.memory_space<vmem>>, vector<4x1xf32>
    %285 = arith.mulf %274, %283 : vector<4x1xf32>
    %286 = arith.subf %284, %285 : vector<4x1xf32>
    %287 = vector.broadcast %283 : vector<4x1xf32> to vector<4x256xf32>
    %288 = arith.mulf %255, %287 : vector<4x256xf32>
    %289 = vector.broadcast %286 : vector<4x1xf32> to vector<4x256xf32>
    %290 = arith.addf %288, %289 : vector<4x256xf32>
    %291 = vector.broadcast %283 : vector<4x1xf32> to vector<4x256xf32>
    %292 = arith.mulf %260, %291 : vector<4x256xf32>
    %293 = vector.broadcast %286 : vector<4x1xf32> to vector<4x256xf32>
    %294 = arith.addf %292, %293 : vector<4x256xf32>
    %295 = arith.addf %12, %290 : vector<4x256xf32>
    %c0_177 = arith.constant 0 : index
    %c0_178 = arith.constant 0 : index
    %c0_179 = arith.constant 0 : index
    %296 = vector.load %arg7[%c0_177, %c0_178, %c0_179] : memref<2x4x256xf32, #tpu.memory_space<vmem>>, vector<1x4x256xf32>
    %297 = vector.shape_cast %296 : vector<1x4x256xf32> to vector<4x256xf32>
    %298 = vector.shape_cast %295 : vector<4x256xf32> to vector<1x4x256xf32>
    tpu.vector_store %arg7[%c0_177, %c0_178, %c0_179], %298 {strides = array<i32>} : memref<2x4x256xf32, #tpu.memory_space<vmem>>, vector<1x4x256xf32>,
    %299 = arith.addf %14, %294 : vector<4x256xf32>
    %c1_180 = arith.constant 1 : index
    %c0_181 = arith.constant 0 : index
    %c0_182 = arith.constant 0 : index
    %300 = vector.load %arg7[%c1_180, %c0_181, %c0_182] : memref<2x4x256xf32, #tpu.memory_space<vmem>>, vector<1x4x256xf32>
    %301 = vector.shape_cast %300 : vector<1x4x256xf32> to vector<4x256xf32>
    %302 = vector.shape_cast %299 : vector<4x256xf32> to vector<1x4x256xf32>
    tpu.vector_store %arg7[%c1_180, %c0_181, %c0_182], %302 {strides = array<i32>} : memref<2x4x256xf32, #tpu.memory_space<vmem>>, vector<1x4x256xf32>,
    return
  }
}

</mosaic_0001>

<bundles_post_ra>
// kernel: resnet_block_forward.1
= control target key start
LH: loop header
LB: loop body
LE: loop exit
PB: predicated region body
PF: predicated region fallthrough
CT: control target
= control target key end

     0   :  { %s2472_s26 = smov 16   ;;  %s2473_s29 = smov 112   ;;  %v26_v15 = vlaneseq  ;;  %vm130_vm1 = vcmask 1043456   ;;  %vm126_vm4 = vcmask 31744   ;;  %s3207_s0 = inlined_call_operand.vmem [shape: f32[2,4,256], index: 0, kind: input, shape index: {}]   ;;  %s3208_s1 = inlined_call_operand.vmem [shape: f32[9,4,4], index: 1, kind: input, shape index: {}]   ;;  %s3209_s2 = inlined_call_operand.vmem [shape: f32[4,1], index: 2, kind: input, shape index: {}]   ;;  %s3210_s3 = inlined_call_operand.vmem [shape: f32[4,1], index: 3, kind: input, shape index: {}]   ;;  %s3211_s4 = inlined_call_operand.vmem [shape: f32[9,4,4], index: 4, kind: input, shape index: {}]   ;;  %s3212_s5 = inlined_call_operand.vmem [shape: f32[4,1], index: 5, kind: input, shape index: {}]   ;;  %s3213_s6 = inlined_call_operand.vmem [shape: f32[4,1], index: 6, kind: input, shape index: {}]   ;;  %s3214_s7 = inlined_call_operand.vmem [shape: f32[2,4,256], index: 7, kind: output, shape index: {}]  }
   0x1   :  { %v2520_v0 = vld [vmem:[%s3207_s0] sm:$0xff]  ;;  %v2528_v3 = vld [vmem:[%s3207_s0 + $0x8] sm:$0xff]  ;;  %s2474_s0 = smov 127   ;;  %s2475_s30 = smov 1  }
   0x2   :  { %43 = vst [vmem:[#allocation1] ss:$2 sm:$0xff] %v2520_v0  ;;  %v2542_v17 = vand.u32 127, %v26_v15  ;;  %v2299_v43 = vld [vmem:[%s3208_s1 + $0x4] sm:$0xf] }
   0x3   :  { %v93_v63 = vld [vmem:[%s3208_s1] sm:$0xf] }
   0x4   :  { %vm29_vm0 = vcmp.lt.s32.totalorder %v2542_v17, 16  ;;  %vm63_vm2 = vcmp.lt.s32.totalorder %v2542_v17, 112  ;;  %v2600_v38 = vadd.s32 128, %v2542_v17  ;;  %v33_v47 = vand.u32 15, %v2542_v17  ;;  %v2450_v50 = vld [vmem:[%s3211_s4 + $0x20] sm:$0xf] }
   0x5   :  { %vm98_vm5 = vcmp.lt.s32.totalorder %v2542_v17, 1  ;;  %vm105_vm6 = vcmp.lt.s32.totalorder %v2542_v17, 127 }
   0x6   :  { %vm32_vm3 = vcmp.ge.s32.totalorder %v2600_v38, 240  ;;  %v34_v46 = vand.u32 15, %v2600_v38  ;;  %vm2646_vm9 = vcmp.eq.s32.totalorder %v33_v47, 15  ;;  %vm2650_vm10 = vcmp.eq.s32.totalorder %v33_v47, 0 }
   0x8   :  { %vm2638_vm7 = vcmp.eq.s32.totalorder %v34_v46, 0  ;;  %vm2642_vm8 = vcmp.eq.s32.totalorder %v34_v46, 15 }
   0x9   :  { %v44_v1 = vld.sshfl [vmem:[#allocation1] sm:$0xff pattern:$0x75316420]  ;;  %v45_v2 = vld.sshfl [vmem:[#allocation1 + $0x8] sm:$0xff pattern:$0x75316420] }
   0xa   :  { %48 = vrot.lane.b32.xlu0 %v44_v1, %s2472_s26  ;;  %54 = vst [vmem:[#allocation1] ss:$2 sm:$0xff] %v2520_v0  ;;  %v2316_v1 = vld [vmem:[%s3208_s1 + $0x8] sm:$0xf] }
  0x11   :  { %v55_v4 = vld.sshfl [vmem:[#allocation1] sm:$0xff pattern:$0x75316420]  ;;  %v56_v5 = vld.sshfl [vmem:[#allocation1 + $0x8] sm:$0xff pattern:$0x75316420] }
  0x12   :  { %50 = vrot.lane.b32.xlu0 %v45_v2, %s2472_s26  ;;  %59 = vrot.lane.b32.xlu1 %v55_v4, %s2473_s29  ;;  %69 = vst [vmem:[#allocation1] ss:$2 sm:$0xff] %v2528_v3 }
  0x19   :  { %v70_v6 = vld.sshfl [vmem:[#allocation1] sm:$0xff pattern:$0x75316420]  ;;  %v71_v7 = vld.sshfl [vmem:[#allocation1 + $0x8] sm:$0xff pattern:$0x75316420] }
  0x1a   :  { %61 = vrot.lane.b32.xlu1 %v56_v5, %s2473_s29  ;;  %80 = vst [vmem:[#allocation1] ss:$2 sm:$0xff] %v2528_v3  ;;  %74 = vrot.lane.b32.xlu2 %v70_v6, %s2472_s26 }
  0x21   :  { %v82_v8 = vld.sshfl [vmem:[#allocation1 + $0x8] sm:$0xff pattern:$0x75316420]  ;;  %v81_v9 = vld.sshfl [vmem:[#allocation1] sm:$0xff pattern:$0x75316420] }
  0x22   :  { %87 = vrot.lane.b32.xlu1 %v82_v8, %s2473_s29  ;;  %85 = vrot.lane.b32.xlu0 %v81_v9, %s2473_s29  ;;  %425 = vst [vmem:[#allocation1] ss:$2 sm:$0xff] %v2520_v0 }
  0x23   :  { %76 = vrot.lane.b32.xlu2 %v71_v7, %s2472_s26 }
  0x29   :  { %v426_v10 = vld.sshfl [vmem:[#allocation1] sm:$0xff pattern:$0x75316420]  ;;  %v427_v11 = vld.sshfl [vmem:[#allocation1 + $0x8] sm:$0xff pattern:$0x75316420] }
  0x2a   :  { %436 = vst [vmem:[#allocation1] ss:$2 sm:$0xff] %v2520_v0 }
  0x31   :  { %v437_v12 = vld.sshfl [vmem:[#allocation1] sm:$0xff pattern:$0x75316420]  ;;  %v438_v13 = vld.sshfl [vmem:[#allocation1 + $0x8] sm:$0xff pattern:$0x75316420] }
  0x32   :  { %500 = vst [vmem:[#allocation1] ss:$2 sm:$0xff] %v2528_v3 }
  0x39   :  { %v502_v18 = vld.sshfl [vmem:[#allocation1 + $0x8] sm:$0xff pattern:$0x75316420]  ;;  %v501_v19 = vld.sshfl [vmem:[#allocation1] sm:$0xff pattern:$0x75316420] }
  0x3a   :  { %511 = vst [vmem:[#allocation1] ss:$2 sm:$0xff] %v2528_v3 }
  0x41   :  { %v513_v25 = vld.sshfl [vmem:[#allocation1 + $0x8] sm:$0xff pattern:$0x75316420]  ;;  %v512_v26 = vld.sshfl [vmem:[#allocation1] sm:$0xff pattern:$0x75316420] }
  0x42   :  { %574 = vst [vmem:[#allocation1] ss:$2 sm:$0xff] %v2520_v0 }
  0x49   :  { %v2567_v31 = vld.sshfl [vmem:[#allocation1] sm:$0xff pattern:$0x75316420]  ;;  %v2569_v32 = vld.sshfl [vmem:[#allocation1 + $0x8] sm:$0xff pattern:$0x75316420] }
  0x4a   :  { %626 = vst [vmem:[#allocation1] ss:$2 sm:$0xff] %v2528_v3 }
  0x74   :  { %v75_v14 = vpop.permute.xlu2 %74 }
  0x7c   :  { %v49_v16 = vpop.permute.xlu0 %48 }
  0x7d   :  { %v77_v20 = vpop.permute.xlu2 %76 }
  0x7e   :  { %v78_v23 = vsel %vm29_vm0, %v75_v14, %v77_v20  ;;  %v79_v35 = vsel %vm29_vm0, %v77_v20, %v75_v14 }
  0x84   :  { %v51_v21 = vpop.permute.xlu0 %50  ;;  %v60_v22 = vpop.permute.xlu1 %59 }
  0x85   :  { %v52_v24 = vsel %vm29_vm0, %v49_v16, %v51_v21  ;;  %v53_v28 = vsel %vm29_vm0, %v51_v21, %v49_v16 }
  0x86   :  { %2302 = vmatpush.msk.msra.mxu1 %vm130_vm1, %v52_v24  ;;  %103 = vrot.lane.b32.xlu2 %v52_v24, %s2474_s0 }
  0x87   :  { %96 = vrot.lane.b32.xlu0 %v52_v24, %s2475_s30  ;;  %2303 = vmatmul.msk.f32.vlgmr.msra.gmra.mxu1 %vm126_vm4, %v2299_v43 }
  0x88   :  { %2310 = vmatpush.msk.msrb.mxu1 %vm130_vm1, %v78_v23 }
  0x8c   :  { %v62_v27 = vpop.permute.xlu1 %61 }
  0x8d   :  { %v2560_v29 = vsel %vm63_vm2, %v60_v22, %v62_v27  ;;  %v65_v39 = vsel %vm63_vm2, %v62_v27, %v60_v22  ;;  %v628_v27 = vld.sshfl [vmem:[#allocation1 + $0x8] sm:$0xff pattern:$0x75316420] }
  0x8e   :  { %v66_v30 = vsel %vm29_vm0, %v2560_v29, %v53_v28  ;;  %v2611_v41 = vsel %vm32_vm3, %v52_v24, %v65_v39 }
  0x8f   :  { %2300 = vmatpush.msk.msra.mxu0 %vm130_vm1, %v66_v30  ;;  %94 = vrot.lane.b32.xlu2 %v66_v30, %s2475_s30 }
  0x90   :  { %101 = vrot.lane.b32.xlu1 %v66_v30, %s2474_s0  ;;  %2301 = vmatmul.msk.f32.vlgmr.msra.gmra.mxu0 %vm126_vm4, %v2299_v43 }
  0x91   :  { %2311 = vmatmul.msk.f32.vlgmr.msrb.gmra.mxu1 %vm126_vm4, %v2299_v43 }
  0x94   :  { %v88_v33 = vpop.permute.xlu1 %87  ;;  %v86_v34 = vpop.permute.xlu0 %85 }
  0x95   :  { %v2577_v36 = vsel %vm63_vm2, %v86_v34, %v88_v33  ;;  %v90_v40 = vsel %vm63_vm2, %v88_v33, %v86_v34 }
  0x96   :  { %v91_v37 = vsel %vm29_vm0, %v2577_v36, %v79_v35  ;;  %v2615_v42 = vsel %vm32_vm3, %v78_v23, %v90_v40  ;;  %v2325_v40 = vld [vmem:[%s3208_s1 + $0xc] sm:$0xf] }
  0x97   :  { %116 = vrot.lane.b32.xlu2 %v91_v37, %s2474_s0  ;;  %110 = vrot.lane.b32.xlu0 %v91_v37, %s2475_s30 }
  0x98   :  { %112 = vrot.lane.b32.xlu1 %v78_v23, %s2475_s30  ;;  %2308 = vmatpush.msk.msrb.mxu0 %vm130_vm1, %v91_v37 }
  0x99   :  { %2309 = vmatmul.msk.f32.vlgmr.msrb.gmra.mxu0 %vm126_vm4, %v2299_v43 }
  0x9f   :  { %118 = vrot.lane.b32.xlu0 %v78_v23, %s2474_s0  ;;  %507 = vrot.lane.b32.xlu2 %v502_v18, %s2475_s30 }
  0xa0   :  { %505 = vrot.lane.b32.xlu1 %v501_v19, %s2475_s30 }
  0xa7   :  { %430 = vrot.lane.b32.xlu2 %v426_v10, %s2475_s30  ;;  %516 = vrot.lane.b32.xlu0 %v512_v26, %s2474_s0  ;;  %v627_v26 = vld.sshfl [vmem:[#allocation1] sm:$0xff pattern:$0x75316420] }
  0xa8   :  { %518 = vrot.lane.b32.xlu1 %v513_v25, %s2474_s0 }
  0xaf   :  { %443 = vrot.lane.b32.xlu2 %v438_v13, %s2474_s0  ;;  %432 = vrot.lane.b32.xlu0 %v427_v11, %s2475_s30 }
  0xb0   :  { %441 = vrot.lane.b32.xlu1 %v437_v12, %s2474_s0 }
  0xb7   :  { %857 = vrot.lane.b32.xlu2 %v2577_v36, %s2474_s0  ;;  %851 = vrot.lane.b32.xlu0 %v2577_v36, %s2475_s30 }
  0xb8   :  { %786 = vrot.lane.b32.xlu1 %v2560_v29, %s2475_s30 }
  0xbf   :  { %788 = vrot.lane.b32.xlu2 %v2611_v41, %s2475_s30  ;;  %859 = vrot.lane.b32.xlu0 %v2615_v42, %s2474_s0 }
  0xc0   :  { %853 = vrot.lane.b32.xlu1 %v2615_v42, %s2475_s30 }
  0xc7   :  { %792 = vrot.lane.b32.xlu0 %v2560_v29, %s2474_s0 }
  0xc8   :  { %794 = vrot.lane.b32.xlu1 %v2611_v41, %s2474_s0 }
  0xe0   :  { %v104_v44 = vpop.permute.xlu2 %103 }
  0xe9   :  { %v95_v45 = vpop.permute.xlu2 %94 }
  0xf1   :  { %v117_v58 = vpop.permute.xlu2 %116 }
  0xf9   :  { %v97_v48 = vpop.permute.xlu0 %96  ;;  %v508_v5 = vpop.permute.xlu2 %507 }
  0xfa   :  { %v99_v54 = vsel %vm98_vm5, %v95_v45, %v97_v48  ;;  %v100_v55 = vsel %vm98_vm5, %v97_v48, %v95_v45 }
 0x101   :  { %v431_v16 = vpop.permute.xlu2 %430 }
 0x102   :  { %v102_v53 = vpop.permute.xlu1 %101 }
 0x103   :  { %v106_v56 = vsel %vm105_vm6, %v102_v53, %v104_v44  ;;  %v107_v57 = vsel %vm105_vm6, %v104_v44, %v102_v53 }
 0x104   :  { %v320_v59 = vsel %vm2646_vm9, %v100_v55, %v106_v56  ;;  %v321_v60 = vsel %vm2642_vm8, %v99_v54, %v107_v57  ;;  %v108_v61 = vsel %vm2650_vm10, %v106_v56, %v100_v55  ;;  %v109_v62 = vsel %vm2638_vm7, %v107_v57, %v99_v54 }
 0x105   :  { %2304 = vmatpush.msk.msra.mxu2 %vm130_vm1, %v108_v61  ;;  %2306 = vmatpush.msk.msra.mxu3 %vm130_vm1, %v109_v62  ;;  %v2343_v61 = vld [vmem:[%s3208_s1 + $0x14] sm:$0xf] }
 0x106   :  { %2317 = vmatpush.msk.msra.mxu0 %vm130_vm1, %v320_v59  ;;  %2319 = vmatpush.msk.msra.mxu1 %vm130_vm1, %v321_v60 }
 0x107   :  { %2305 = vmatmul.msk.f32.vlgmr.msra.gmra.mxu2 %vm126_vm4, %v93_v63  ;;  %2307 = vmatmul.msk.f32.vlgmr.msra.gmra.mxu3 %vm126_vm4, %v93_v63 }
 0x108   :  { %2318 = vmatmul.msk.f32.vlgmr.msra.gmra.mxu0 %vm126_vm4, %v2316_v1  ;;  %2320 = vmatmul.msk.f32.vlgmr.msra.gmra.mxu1 %vm126_vm4, %v2316_v1 }
 0x109   :  { %v111_v2 = vpop.permute.xlu0 %110  ;;  %v444_v30 = vpop.permute.xlu2 %443 }
 0x10a   :  { %v113_v4 = vpop.permute.xlu1 %112 }
 0x10b   :  { %v114_v10 = vsel %vm98_vm5, %v111_v2, %v113_v4  ;;  %v115_v11 = vsel %vm98_vm5, %v113_v4, %v111_v2 }
 0x111   :  { %v119_v6 = vpop.permute.xlu0 %118 }
 0x112   :  { %v120_v7 = vsel %vm105_vm6, %v117_v58, %v119_v6  ;;  %v121_v8 = vsel %vm105_vm6, %v119_v6, %v117_v58  ;;  %v506_v9 = vpop.permute.xlu1 %505 }
 0x113   :  { %v373_v12 = vsel %vm2646_vm9, %v115_v11, %v120_v7  ;;  %v374_v13 = vsel %vm2642_vm8, %v114_v10, %v121_v8  ;;  %v122_v14 = vsel %vm2650_vm10, %v120_v7, %v115_v11  ;;  %v123_v15 = vsel %vm2638_vm7, %v121_v8, %v114_v10 }
 0x114   :  { %2312 = vmatpush.msk.msrb.mxu2 %vm130_vm1, %v122_v14  ;;  %2314 = vmatpush.msk.msrb.mxu3 %vm130_vm1, %v123_v15  ;;  %v509_v20 = vsel %vm98_vm5, %v506_v9, %v508_v5  ;;  %v510_v21 = vsel %vm98_vm5, %v508_v5, %v506_v9  ;;  %v154_v14 = vpop.f32.mrf.mxu0  ;;  %v174_v15 = vpop.f32.mrf.mxu1 }
 0x115   :  { %2313 = vmatmul.msk.f32.vlgmr.msrb.gmra.mxu2 %vm126_vm4, %v93_v63  ;;  %2315 = vmatmul.msk.f32.vlgmr.msrb.gmra.mxu3 %vm126_vm4, %v93_v63 }
 0x116   :  { %2321 = vmatpush.msk.msra.mxu2 %vm130_vm1, %v373_v12  ;;  %2323 = vmatpush.msk.msra.mxu3 %vm130_vm1, %v374_v13 }
 0x119   :  { %v517_v18 = vpop.permute.xlu0 %516 }
 0x11a   :  { %v519_v19 = vpop.permute.xlu1 %518 }
 0x11b   :  { %v520_v22 = vsel %vm105_vm6, %v517_v18, %v519_v19  ;;  %v521_v23 = vsel %vm105_vm6, %v519_v19, %v517_v18 }
 0x11c   :  { %v522_v24 = vsel %vm2650_vm10, %v520_v22, %v510_v21  ;;  %v523_v25 = vsel %vm2638_vm7, %v521_v23, %v509_v20  ;;  %v730_v45 = vsel %vm2646_vm9, %v510_v21, %v520_v22  ;;  %v731_v46 = vsel %vm2642_vm8, %v509_v20, %v521_v23  ;;  %v269_v18 = vpop.f32.mrf.mxu1 }
 0x11d   :  { %2330 = vmatpush.msk.msrb.mxu2 %vm130_vm1, %v522_v24  ;;  %2332 = vmatpush.msk.msrb.mxu3 %vm130_vm1, %v523_v25 }
 0x11e   :  { %2322 = vmatmul.msk.f32.vlgmr.msra.gmra.mxu2 %vm126_vm4, %v2316_v1  ;;  %2324 = vmatmul.msk.f32.vlgmr.msra.gmra.mxu3 %vm126_vm4, %v2316_v1 }
 0x11f   :  { %2339 = vmatpush.msk.msra.mxu2 %vm130_vm1, %v627_v26  ;;  %2341 = vmatpush.msk.msra.mxu3 %vm130_vm1, %v628_v27 }
 0x121   :  { %v433_v28 = vpop.permute.xlu0 %432 }
 0x122   :  { %v442_v33 = vpop.permute.xlu1 %441  ;;  %v434_v34 = vsel %vm98_vm5, %v431_v16, %v433_v28  ;;  %v435_v35 = vsel %vm98_vm5, %v433_v28, %v431_v16  ;;  %v249_v16 = vpop.f32.mrf.mxu0 }
 0x123   :  { %v445_v37 = vsel %vm105_vm6, %v442_v33, %v444_v30  ;;  %v446_v39 = vsel %vm105_vm6, %v444_v30, %v442_v33 }
 0x124   :  { %v447_v43 = vsel %vm2650_vm10, %v445_v37, %v435_v35  ;;  %v448_v44 = vsel %vm2638_vm7, %v446_v39, %v434_v34  ;;  %v677_v47 = vsel %vm2646_vm9, %v435_v35, %v445_v37  ;;  %v678_v48 = vsel %vm2642_vm8, %v434_v34, %v446_v39 }
 0x125   :  { %2326 = vmatpush.msk.msrb.mxu0 %vm130_vm1, %v447_v43  ;;  %2328 = vmatpush.msk.msrb.mxu1 %vm130_vm1, %v448_v44 }
 0x126   :  { %2327 = vmatmul.msk.f32.vlgmr.msrb.gmra.mxu0 %vm126_vm4, %v2325_v40  ;;  %2329 = vmatmul.msk.f32.vlgmr.msrb.gmra.mxu1 %vm126_vm4, %v2325_v40 }
 0x127   :  { %2331 = vmatmul.msk.f32.vlgmr.msrb.gmra.mxu2 %vm126_vm4, %v2325_v40  ;;  %2333 = vmatmul.msk.f32.vlgmr.msrb.gmra.mxu3 %vm126_vm4, %v2325_v40 }
 0x128   :  { %2335 = vmatpush.msk.msra.mxu0 %vm130_vm1, %v2567_v31  ;;  %2337 = vmatpush.msk.msra.mxu1 %vm130_vm1, %v2569_v32  ;;  %v2334_v31 = vld [vmem:[%s3208_s1 + $0x10] sm:$0xf]  ;;  %v858_v32 = vpop.permute.xlu2 %857 }
 0x129   :  { %2348 = vmatpush.msk.msrb.mxu2 %vm130_vm1, %v730_v45  ;;  %2350 = vmatpush.msk.msrb.mxu3 %vm130_vm1, %v731_v46  ;;  %v852_v53 = vpop.permute.xlu0 %851 }
 0x12a   :  { %2344 = vmatpush.msk.msrb.mxu0 %vm130_vm1, %v677_v47  ;;  %2346 = vmatpush.msk.msrb.mxu1 %vm130_vm1, %v678_v48  ;;  %v787_v54 = vpop.permute.xlu1 %786 }
 0x12e   :  { %2336 = vmatmul.msk.f32.vlgmr.msra.gmra.mxu0 %vm126_vm4, %v2334_v31  ;;  %2338 = vmatmul.msk.f32.vlgmr.msra.gmra.mxu1 %vm126_vm4, %v2334_v31 }
 0x12f   :  { %2340 = vmatmul.msk.f32.vlgmr.msra.gmra.mxu2 %vm126_vm4, %v2334_v31  ;;  %2342 = vmatmul.msk.f32.vlgmr.msra.gmra.mxu3 %vm126_vm4, %v2334_v31 }
 0x130   :  { %v789_v2 = vpop.permute.xlu2 %788 }
 0x131   :  { %v860_v55 = vpop.permute.xlu0 %859  ;;  %v790_v5 = vsel %vm98_vm5, %v787_v54, %v789_v2  ;;  %v791_v6 = vsel %vm98_vm5, %v789_v2, %v787_v54 }
 0x132   :  { %v854_v56 = vpop.permute.xlu1 %853  ;;  %v861_v57 = vsel %vm105_vm6, %v858_v32, %v860_v55  ;;  %v862_v58 = vsel %vm105_vm6, %v860_v55, %v858_v32 }
 0x133   :  { %v855_v59 = vsel %vm98_vm5, %v852_v53, %v854_v56  ;;  %v856_v60 = vsel %vm98_vm5, %v854_v56, %v852_v53 }
 0x134   :  { %v863_v62 = vsel %vm2650_vm10, %v861_v57, %v856_v60  ;;  %v864_v63 = vsel %vm2638_vm7, %v862_v58, %v855_v59  ;;  %v1069_v10 = vsel %vm2646_vm9, %v856_v60, %v861_v57  ;;  %v1070_v11 = vsel %vm2642_vm8, %v855_v59, %v862_v58 }
 0x135   :  { %2357 = vmatpush.msk.msra.mxu2 %vm130_vm1, %v863_v62  ;;  %2359 = vmatpush.msk.msra.mxu3 %vm130_vm1, %v864_v63 }
 0x136   :  { %2345 = vmatmul.msk.f32.vlgmr.msrb.gmra.mxu0 %vm126_vm4, %v2343_v61  ;;  %2347 = vmatmul.msk.f32.vlgmr.msrb.gmra.mxu1 %vm126_vm4, %v2343_v61 }
 0x137   :  { %2349 = vmatmul.msk.f32.vlgmr.msrb.gmra.mxu2 %vm126_vm4, %v2343_v61  ;;  %2351 = vmatmul.msk.f32.vlgmr.msrb.gmra.mxu3 %vm126_vm4, %v2343_v61 }
 0x138   :  { %2366 = vmatpush.msk.msrb.mxu2 %vm130_vm1, %v2577_v36  ;;  %2368 = vmatpush.msk.msrb.mxu3 %vm130_vm1, %v2615_v42  ;;  %v2352_v36 = vld [vmem:[%s3208_s1 + $0x18] sm:$0xf] }
 0x139   :  { %v793_v1 = vpop.permute.xlu0 %792 }
 0x13a   :  { %v795_v4 = vpop.permute.xlu1 %794 }
 0x13b   :  { %v796_v7 = vsel %vm105_vm6, %v793_v1, %v795_v4  ;;  %v797_v8 = vsel %vm105_vm6, %v795_v4, %v793_v1 }
 0x13c   :  { %v798_v42 = vsel %vm2650_vm10, %v796_v7, %v791_v6  ;;  %v799_v9 = vsel %vm2638_vm7, %v797_v8, %v790_v5  ;;  %v1016_v12 = vsel %vm2646_vm9, %v791_v6, %v796_v7  ;;  %v1017_v13 = vsel %vm2642_vm8, %v790_v5, %v797_v8 }
 0x13d   :  { %2353 = vmatpush.msk.msra.mxu0 %vm130_vm1, %v798_v42  ;;  %2355 = vmatpush.msk.msra.mxu1 %vm130_vm1, %v799_v9 }
 0x13e   :  { %2354 = vmatmul.msk.f32.vlgmr.msra.gmra.mxu0 %vm126_vm4, %v2352_v36  ;;  %2356 = vmatmul.msk.f32.vlgmr.msra.gmra.mxu1 %vm126_vm4, %v2352_v36 }
 0x13f   :  { %2358 = vmatmul.msk.f32.vlgmr.msra.gmra.mxu2 %vm126_vm4, %v2352_v36  ;;  %2360 = vmatmul.msk.f32.vlgmr.msra.gmra.mxu3 %vm126_vm4, %v2352_v36 }
 0x140   :  { %2362 = vmatpush.msk.msrb.mxu0 %vm130_vm1, %v2560_v29  ;;  %2364 = vmatpush.msk.msrb.mxu1 %vm130_vm1, %v2611_v41  ;;  %v2361_v29 = vld [vmem:[%s3208_s1 + $0x1c] sm:$0xf]  ;;  %v2370_v41 = vld [vmem:[%s3208_s1 + $0x20] sm:$0xf] }
 0x141   :  { %2375 = vmatpush.msk.msra.mxu2 %vm130_vm1, %v1069_v10  ;;  %2377 = vmatpush.msk.msra.mxu3 %vm130_vm1, %v1070_v11 }
 0x142   :  { %2371 = vmatpush.msk.msra.mxu0 %vm130_vm1, %v1016_v12  ;;  %2373 = vmatpush.msk.msra.mxu1 %vm130_vm1, %v1017_v13 }
 0x146   :  { %2363 = vmatmul.msk.f32.vlgmr.msrb.gmra.mxu0 %vm126_vm4, %v2361_v29  ;;  %2365 = vmatmul.msk.f32.vlgmr.msrb.gmra.mxu1 %vm126_vm4, %v2361_v29 }
 0x147   :  { %2367 = vmatmul.msk.f32.vlgmr.msrb.gmra.mxu2 %vm126_vm4, %v2361_v29  ;;  %2369 = vmatmul.msk.f32.vlgmr.msrb.gmra.mxu3 %vm126_vm4, %v2361_v29 }
 0x14e   :  { %2372 = vmatmul.msk.f32.vlgmr.msra.gmra.mxu0 %vm126_vm4, %v2370_v41  ;;  %2374 = vmatmul.msk.f32.vlgmr.msra.gmra.mxu1 %vm126_vm4, %v2370_v41 }
 0x14f   :  { %2376 = vmatmul.msk.f32.vlgmr.msra.gmra.mxu2 %vm126_vm4, %v2370_v41  ;;  %2378 = vmatmul.msk.f32.vlgmr.msra.gmra.mxu3 %vm126_vm4, %v2370_v41 }
 0x185   :  { %v348_v23 = vpop.f32.mrf.mxu0  ;;  %v368_v24 = vpop.f32.mrf.mxu1 }
 0x18a   :  { %v203_v19 = vpop.f32.mrf.mxu2  ;;  %v223_v20 = vpop.f32.mrf.mxu3 }
 0x18b   :  { %v204_v48 = vadd.f32 %v203_v19, %v154_v14  ;;  %v224_v53 = vadd.f32 %v223_v20, %v174_v15 }
 0x18d   :  { %v371_v54 = vadd.f32 %v348_v23, %v204_v48  ;;  %v372_v31 = vadd.f32 %v368_v24, %v224_v53 }
 0x198   :  { %v295_v21 = vpop.f32.mrf.mxu2  ;;  %v315_v22 = vpop.f32.mrf.mxu3 }
 0x199   :  { %v296_v62 = vadd.f32 %v295_v21, %v249_v16  ;;  %v316_v63 = vadd.f32 %v315_v22, %v269_v18 }
 0x1a1   :  { %v398_v25 = vpop.f32.mrf.mxu2  ;;  %v418_v26 = vpop.f32.mrf.mxu3 }
 0x1a2   :  { %v421_v4 = vadd.f32 %v398_v25, %v296_v62  ;;  %v422_v5 = vadd.f32 %v418_v26, %v316_v63 }
 0x1a3   :  { %v475_v27 = vpop.f32.mrf.mxu0  ;;  %v495_v28 = vpop.f32.mrf.mxu1 }
 0x1a4   :  { %v498_v32 = vadd.f32 %v475_v27, %v371_v54  ;;  %v499_v55 = vadd.f32 %v495_v28, %v372_v31  ;;  %v2476_v31 = vmov 0  }
 0x1a5   :  { %2465 = vset.pattern.permute.xlu2 %v2476_v31  ;;  %2466 = vset.pattern.permute.xlu0 %v2476_v31 }
 0x1a6   :  { %2467 = vset.pattern.permute.xlu1 %v2476_v31 }
 0x1aa   :  { %v547_v30 = vpop.f32.mrf.mxu2  ;;  %v567_v33 = vpop.f32.mrf.mxu3 }
 0x1ab   :  { %v601_v34 = vpop.f32.mrf.mxu0  ;;  %v621_v35 = vpop.f32.mrf.mxu1  ;;  %v570_v8 = vadd.f32 %v547_v30, %v421_v4  ;;  %v571_v36 = vadd.f32 %v567_v33, %v422_v5 }
 0x1ac   :  { %v624_v60 = vadd.f32 %v601_v34, %v498_v32  ;;  %v625_v61 = vadd.f32 %v621_v35, %v499_v55 }
 0x1b2   :  { %v650_v37 = vpop.f32.mrf.mxu2  ;;  %v670_v39 = vpop.f32.mrf.mxu3 }
 0x1b3   :  { %v705_v40 = vpop.f32.mrf.mxu0  ;;  %v725_v43 = vpop.f32.mrf.mxu1  ;;  %v673_v12 = vadd.f32 %v650_v37, %v570_v8  ;;  %v674_v13 = vadd.f32 %v670_v39, %v571_v36 }
 0x1b4   :  { %v728_v1 = vadd.f32 %v705_v40, %v624_v60  ;;  %v729_v2 = vadd.f32 %v725_v43, %v625_v61 }
 0x1ba   :  { %v755_v44 = vpop.f32.mrf.mxu2  ;;  %v775_v45 = vpop.f32.mrf.mxu3 }
 0x1bb   :  { %v826_v46 = vpop.f32.mrf.mxu0  ;;  %v846_v47 = vpop.f32.mrf.mxu1  ;;  %v778_v16 = vadd.f32 %v755_v44, %v673_v12  ;;  %v779_v18 = vadd.f32 %v775_v45, %v674_v13 }
 0x1bc   :  { %v849_v6 = vadd.f32 %v826_v46, %v728_v1  ;;  %v850_v7 = vadd.f32 %v846_v47, %v729_v2 }
 0x1c2   :  { %v888_v56 = vpop.f32.mrf.mxu2  ;;  %v908_v57 = vpop.f32.mrf.mxu3 }
 0x1c3   :  { %v941_v58 = vpop.f32.mrf.mxu0  ;;  %v961_v59 = vpop.f32.mrf.mxu1  ;;  %v911_v23 = vadd.f32 %v888_v56, %v778_v16  ;;  %v912_v24 = vadd.f32 %v908_v57, %v779_v18 }
 0x1c4   :  { %v964_v42 = vadd.f32 %v941_v58, %v849_v6  ;;  %v965_v9 = vadd.f32 %v961_v59, %v850_v7  ;;  %v1149_v7 = vld [vmem:[%s3209_s2] sm:$0xf] }
 0x1ca   :  { %v989_v10 = vpop.f32.mrf.mxu2  ;;  %v1009_v11 = vpop.f32.mrf.mxu3 }
 0x1cb   :  { %v1044_v29 = vpop.f32.mrf.mxu0  ;;  %v1064_v41 = vpop.f32.mrf.mxu1  ;;  %v1012_v28 = vadd.f32 %v989_v10, %v911_v23  ;;  %v1013_v30 = vadd.f32 %v1009_v11, %v912_v24 }
 0x1cc   :  { %v2844_v14 = vadd.f32 %v1044_v29, %v964_v42  ;;  %v2846_v15 = vadd.f32 %v1064_v41, %v965_v9  ;;  %v1162_v9 = vld [vmem:[%s3210_s3] sm:$0xf] }
 0x1ce   :  { %v1119_v19 = vsel %vm130_vm1, %v2844_v14, 0.0  ;;  %v1120_v20 = vsel %vm130_vm1, %v2846_v15, 0.0  ;;  %v1124_v21 = vmul.f32 %v2844_v14, %v2844_v14  ;;  %v1125_v22 = vmul.f32 %v2846_v15, %v2846_v15 }
 0x1cf   :  { %v1121_v25 = vadd.f32 %v1120_v20, %v1119_v19 }
 0x1d0   :  { %v1126_v26 = vsel %vm130_vm1, %v1124_v21, 0.0  ;;  %v1127_v27 = vsel %vm130_vm1, %v1125_v22, 0.0 }
 0x1d1   :  { %1122 = vadd.xlane.f32.xlu2 %v1121_v25  ;;  %v1128_v33 = vadd.f32 %v1127_v27, %v1126_v26 }
 0x1d2   :  { %v1094_v34 = vpop.f32.mrf.mxu2  ;;  %v1114_v35 = vpop.f32.mrf.mxu3 }
 0x1d3   :  { %v1117_v37 = vadd.f32 %v1094_v34, %v1012_v28  ;;  %v1118_v39 = vadd.f32 %v1114_v35, %v1013_v30  ;;  %1129 = vadd.xlane.f32.xlu1 %v1128_v33 }
 0x1d5   :  { %v1131_v40 = vsel %vm130_vm1, %v1117_v37, 0.0  ;;  %v1132_v43 = vsel %vm130_vm1, %v1118_v39, 0.0  ;;  %v1137_v44 = vmul.f32 %v1117_v37, %v1117_v37  ;;  %v1138_v45 = vmul.f32 %v1118_v39, %v1118_v39 }
 0x1d6   :  { %v1133_v46 = vadd.f32 %v1132_v43, %v1131_v40 }
 0x1d7   :  { %v1139_v47 = vsel %vm130_vm1, %v1137_v44, 0.0  ;;  %v1140_v48 = vsel %vm130_vm1, %v1138_v45, 0.0 }
 0x1d8   :  { %1134 = vadd.xlane.f32.xlu0 %v1133_v46  ;;  %v1141_v53 = vadd.f32 %v1140_v48, %v1139_v47 }
 0x1da   :  { %1142 = vadd.xlane.f32.xlu2 %v1141_v53 }
 0x244   :  { %v1123_v54 = vpop.xlane.xlu2 %1122 }
 0x246   :  { %v1130_v56 = vpop.xlane.xlu1 %1129 }
 0x24b   :  { %v1135_v32 = vpop.xlane.xlu0 %1134 }
 0x24c   :  { %v1136_v55 = vadd.f32 %v1135_v32, %v1123_v54  ;;  %v2379_v32 = vld [vmem:[%s3211_s4 + $0x4] sm:$0xf] }
 0x24d   :  { %v1143_v57 = vpop.xlane.xlu2 %1142 }
 0x24e   :  { %v1145_v58 = vmul.f32 0.001953125, %v1136_v55  ;;  %v1144_v59 = vadd.f32 %v1143_v57, %v1130_v56 }
 0x250   :  { %v1147_v60 = vmul.f32 %v1145_v58, %v1145_v58  ;;  %v1146_v61 = vmul.f32 0.001953125, %v1144_v59 }
 0x252   :  { %v1148_v62 = vsub.f32 %v1146_v61, %v1147_v60 }
 0x254   :  { %v1150_v63 = vadd.f32 1e-05, %v1148_v62 }
 0x256   :  { %2468 = vrsqrt.f32 %v1150_v63  ;;  %vm1157_vm12 = vweird.f32 %v1150_v63 }
 0x25c   :  { %v2469_v1 = vpop.eup %2468 }
 0x25d   :  { %v1152_v2 = vmul.f32 %v2469_v1, %v1150_v63  ;;  %vm1158_vm11 = vweird.f32 %v2469_v1 }
 0x25e   :  { %vm1159_vm13 = vmor %vm1157_vm12, %vm1158_vm11 }
 0x25f   :  { %v1153_v4 = vmul.f32 %v2469_v1, %v1152_v2 }
 0x261   :  { %v1154_v5 = vmul.f32 0.5, %v1153_v4  ;;  %v1215_v4 = vld [vmem:[%s3211_s4] sm:$0xf] }
 0x263   :  { %v1155_v6 = vsub.f32 1.5, %v1154_v5  ;;  %v2396_v5 = vld [vmem:[%s3211_s4 + $0x8] sm:$0xf] }
 0x265   :  { %v1156_v8 = vmul.f32 %v2469_v1, %v1155_v6 }
 0x267   :  { %v1160_v36 = vsel %vm1159_vm13, %v2469_v1, %v1156_v8 }
 0x268   :  { %v1161_v42 = vmul.f32 %v1160_v36, %v1149_v7 }
 0x26a   :  { %1167 = vperm.xlu2 %2465, %v1161_v42   ;;  %v1163_v10 = vmul.f32 %v1161_v42, %v1145_v58 }
 0x26c   :  { %v1164_v11 = vsub.f32 %v1162_v9, %v1163_v10 }
 0x26e   :  { %1174 = vperm.xlu0 %2466, %v1164_v11  }
 0x2c4   :  { %v1168_v12 = vpop.permute.xlu2 %1167 }
 0x2c5   :  { %v1170_v13 = vmul.f32 %v1168_v12, %v2844_v14  ;;  %v1171_v29 = vmul.f32 %v1168_v12, %v2846_v15  ;;  %v1181_v41 = vmul.f32 %v1168_v12, %v1117_v37  ;;  %v1182_v14 = vmul.f32 %v1168_v12, %v1118_v39 }
 0x2e0   :  { %v1175_v16 = vpop.permute.xlu0 %1174 }
 0x2e1   :  { %v1177_v18 = vadd.f32 %v1175_v16, %v1170_v13  ;;  %v1178_v19 = vadd.f32 %v1175_v16, %v1171_v29  ;;  %v1183_v20 = vadd.f32 %v1181_v41, %v1175_v16  ;;  %v1184_v15 = vadd.f32 %v1182_v14, %v1175_v16 }
 0x2e3   :  { %v2870_v21 = vmax.f32 %v1177_v18, 0.0  ;;  %v2872_v22 = vmax.f32 %v1178_v19, 0.0  ;;  %v2874_v23 = vmax.f32 %v1183_v20, 0.0  ;;  %v2886_v24 = vmax.f32 %v1184_v15, 0.0 }
 0x2e5   :  { %1189 = vrot.lane.b32.xlu2 %v2872_v22, %s2472_s26  ;;  %1187 = vrot.lane.b32.xlu1 %v2870_v21, %s2472_s26 }
 0x2e6   :  { %1207 = vrot.lane.b32.xlu0 %v2874_v23, %s2473_s29 }
 0x2ed   :  { %1195 = vrot.lane.b32.xlu2 %v2872_v22, %s2473_s29  ;;  %1193 = vrot.lane.b32.xlu1 %v2870_v21, %s2473_s29 }
 0x2f5   :  { %1203 = vrot.lane.b32.xlu2 %v2886_v24, %s2472_s26  ;;  %1201 = vrot.lane.b32.xlu1 %v2874_v23, %s2472_s26 }
 0x2fd   :  { %1209 = vrot.lane.b32.xlu1 %v2886_v24, %s2473_s29 }
 0x33f   :  { %v1190_v25 = vpop.permute.xlu2 %1189 }
 0x347   :  { %v1196_v28 = vpop.permute.xlu2 %1195 }
 0x34f   :  { %v1204_v37 = vpop.permute.xlu2 %1203 }
 0x357   :  { %v1188_v26 = vpop.permute.xlu1 %1187 }
 0x358   :  { %v1191_v27 = vsel %vm29_vm0, %v1188_v26, %v1190_v25  ;;  %v1192_v33 = vsel %vm29_vm0, %v1190_v25, %v1188_v26  ;;  %v1208_v43 = vpop.permute.xlu0 %1207 }
 0x359   :  { %2382 = vmatpush.msk.msrb.mxu1 %vm130_vm1, %v1191_v27  ;;  %1224 = vrot.lane.b32.xlu2 %v1191_v27, %s2474_s0 }
 0x35a   :  { %1218 = vrot.lane.b32.xlu0 %v1191_v27, %s2475_s30  ;;  %2383 = vmatmul.msk.f32.vlgmr.msrb.gmra.mxu1 %vm126_vm4, %v2379_v32 }
 0x35f   :  { %v1194_v30 = vpop.permute.xlu1 %1193 }
 0x360   :  { %v2903_v34 = vsel %vm63_vm2, %v1194_v30, %v1196_v28  ;;  %v1198_v54 = vsel %vm63_vm2, %v1196_v28, %v1194_v30 }
 0x361   :  { %v1199_v35 = vsel %vm29_vm0, %v2903_v34, %v1192_v33  ;;  %v2962_v31 = vsel %vm32_vm3, %v1191_v27, %v1198_v54 }
 0x362   :  { %2380 = vmatpush.msk.msrb.mxu0 %vm130_vm1, %v1199_v35  ;;  %1216 = vrot.lane.b32.xlu2 %v1199_v35, %s2475_s30 }
 0x363   :  { %1222 = vrot.lane.b32.xlu1 %v1199_v35, %s2474_s0  ;;  %2381 = vmatmul.msk.f32.vlgmr.msrb.gmra.mxu0 %vm126_vm4, %v2379_v32 }
 0x367   :  { %v1202_v39 = vpop.permute.xlu1 %1201 }
 0x368   :  { %v1205_v40 = vsel %vm29_vm0, %v1202_v39, %v1204_v37  ;;  %v1206_v45 = vsel %vm29_vm0, %v1204_v37, %v1202_v39 }
 0x369   :  { %2390 = vmatpush.msk.msra.mxu1 %vm130_vm1, %v1205_v40 }
 0x36a   :  { %2391 = vmatmul.msk.f32.vlgmr.msra.gmra.mxu1 %vm126_vm4, %v2379_v32 }
 0x36b   :  { %1232 = vrot.lane.b32.xlu1 %v1205_v40, %s2475_s30 }
 0x36f   :  { %v1210_v44 = vpop.permute.xlu1 %1209 }
 0x370   :  { %v2919_v46 = vsel %vm63_vm2, %v1208_v43, %v1210_v44  ;;  %v1212_v48 = vsel %vm63_vm2, %v1210_v44, %v1208_v43 }
 0x371   :  { %v1213_v47 = vsel %vm29_vm0, %v2919_v46, %v1206_v45  ;;  %v2950_v53 = vsel %vm32_vm3, %v1205_v40, %v1212_v48 }
 0x372   :  { %1236 = vrot.lane.b32.xlu2 %v1213_v47, %s2474_s0  ;;  %1230 = vrot.lane.b32.xlu0 %v1213_v47, %s2475_s30 }
 0x373   :  { %1608 = vrot.lane.b32.xlu1 %v2874_v23, %s2475_s30  ;;  %2388 = vmatpush.msk.msra.mxu0 %vm130_vm1, %v1213_v47 }
 0x374   :  { %2389 = vmatmul.msk.f32.vlgmr.msra.gmra.mxu0 %vm126_vm4, %v2379_v32 }
 0x37a   :  { %1610 = vrot.lane.b32.xlu2 %v2886_v24, %s2475_s30  ;;  %1238 = vrot.lane.b32.xlu0 %v1205_v40, %s2474_s0 }
 0x37b   :  { %1616 = vrot.lane.b32.xlu1 %v2886_v24, %s2474_s0 }
 0x382   :  { %1543 = vrot.lane.b32.xlu2 %v2870_v21, %s2475_s30  ;;  %1614 = vrot.lane.b32.xlu0 %v2874_v23, %s2474_s0 }
 0x383   :  { %1549 = vrot.lane.b32.xlu1 %v2870_v21, %s2474_s0 }
 0x38a   :  { %1551 = vrot.lane.b32.xlu2 %v2872_v22, %s2474_s0  ;;  %1545 = vrot.lane.b32.xlu0 %v2872_v22, %s2475_s30 }
 0x38b   :  { %1882 = vrot.lane.b32.xlu1 %v2903_v34, %s2475_s30 }
 0x392   :  { %1953 = vrot.lane.b32.xlu2 %v2919_v46, %s2474_s0  ;;  %1947 = vrot.lane.b32.xlu0 %v2919_v46, %s2475_s30 }
 0x393   :  { %1949 = vrot.lane.b32.xlu1 %v2950_v53, %s2475_s30 }
 0x39a   :  { %1884 = vrot.lane.b32.xlu2 %v2962_v31, %s2475_s30  ;;  %1955 = vrot.lane.b32.xlu0 %v2950_v53, %s2474_s0 }
 0x39b   :  { %1890 = vrot.lane.b32.xlu1 %v2962_v31, %s2474_s0 }
 0x3a2   :  { %1888 = vrot.lane.b32.xlu0 %v2903_v34, %s2474_s0 }
 0x3b3   :  { %v1225_v38 = vpop.permute.xlu2 %1224 }
 0x3bc   :  { %v1217_v56 = vpop.permute.xlu2 %1216 }
 0x3cc   :  { %v1219_v55 = vpop.permute.xlu0 %1218  ;;  %v1237_v7 = vpop.permute.xlu2 %1236 }
 0x3cd   :  { %v1220_v58 = vsel %vm98_vm5, %v1217_v56, %v1219_v55  ;;  %v1221_v59 = vsel %vm98_vm5, %v1219_v55, %v1217_v56 }
 0x3d4   :  { %v1611_v42 = vpop.permute.xlu2 %1610 }
 0x3d5   :  { %v1223_v57 = vpop.permute.xlu1 %1222 }
 0x3d6   :  { %v1226_v60 = vsel %vm105_vm6, %v1223_v57, %v1225_v38  ;;  %v1227_v61 = vsel %vm105_vm6, %v1225_v38, %v1223_v57 }
 0x3d7   :  { %v1228_v62 = vsel %vm2650_vm10, %v1226_v60, %v1221_v59  ;;  %v1229_v63 = vsel %vm2638_vm7, %v1227_v61, %v1220_v58  ;;  %v1438_v1 = vsel %vm2646_vm9, %v1221_v59, %v1226_v60  ;;  %v1439_v2 = vsel %vm2642_vm8, %v1220_v58, %v1227_v61 }
 0x3d8   :  { %2384 = vmatpush.msk.msrb.mxu2 %vm130_vm1, %v1228_v62  ;;  %2386 = vmatpush.msk.msrb.mxu3 %vm130_vm1, %v1229_v63  ;;  %v2423_v62 = vld [vmem:[%s3211_s4 + $0x14] sm:$0xf] }
 0x3d9   :  { %2397 = vmatpush.msk.msrb.mxu0 %vm130_vm1, %v1438_v1  ;;  %2399 = vmatpush.msk.msrb.mxu1 %vm130_vm1, %v1439_v2 }
 0x3da   :  { %2385 = vmatmul.msk.f32.vlgmr.msrb.gmra.mxu2 %vm126_vm4, %v1215_v4  ;;  %2387 = vmatmul.msk.f32.vlgmr.msrb.gmra.mxu3 %vm126_vm4, %v1215_v4 }
 0x3db   :  { %2398 = vmatmul.msk.f32.vlgmr.msrb.gmra.mxu0 %vm126_vm4, %v2396_v5  ;;  %2400 = vmatmul.msk.f32.vlgmr.msrb.gmra.mxu1 %vm126_vm4, %v2396_v5 }
 0x3dc   :  { %v1544_v20 = vpop.permute.xlu2 %1543 }
 0x3dd   :  { %v1233_v6 = vpop.permute.xlu1 %1232 }
 0x3e0   :  { %v1272_v51 = vpop.f32.mrf.mxu0 }
 0x3e4   :  { %v1231_v8 = vpop.permute.xlu0 %1230  ;;  %v1552_v35 = vpop.permute.xlu2 %1551 }
 0x3e5   :  { %v1609_v36 = vpop.permute.xlu1 %1608  ;;  %v1234_v10 = vsel %vm98_vm5, %v1231_v8, %v1233_v6  ;;  %v1235_v11 = vsel %vm98_vm5, %v1233_v6, %v1231_v8 }
 0x3e6   :  { %v1612_v15 = vsel %vm98_vm5, %v1609_v36, %v1611_v42  ;;  %v1613_v25 = vsel %vm98_vm5, %v1611_v42, %v1609_v36 }
 0x3ec   :  { %v1239_v9 = vpop.permute.xlu0 %1238 }
 0x3ed   :  { %v1240_v12 = vsel %vm105_vm6, %v1237_v7, %v1239_v9  ;;  %v1241_v13 = vsel %vm105_vm6, %v1239_v9, %v1237_v7  ;;  %v1617_v29 = vpop.permute.xlu1 %1616 }
 0x3ee   :  { %v1242_v41 = vsel %vm2650_vm10, %v1240_v12, %v1235_v11  ;;  %v1243_v16 = vsel %vm2638_vm7, %v1241_v13, %v1234_v10  ;;  %v1491_v18 = vsel %vm2646_vm9, %v1235_v11, %v1240_v12  ;;  %v1492_v19 = vsel %vm2642_vm8, %v1234_v10, %v1241_v13 }
 0x3ef   :  { %2392 = vmatpush.msk.msra.mxu2 %vm130_vm1, %v1242_v41  ;;  %2394 = vmatpush.msk.msra.mxu3 %vm130_vm1, %v1243_v16 }
 0x3f0   :  { %2393 = vmatmul.msk.f32.vlgmr.msra.gmra.mxu2 %vm126_vm4, %v1215_v4  ;;  %2395 = vmatmul.msk.f32.vlgmr.msra.gmra.mxu3 %vm126_vm4, %v1215_v4 }
 0x3f1   :  { %2401 = vmatpush.msk.msrb.mxu2 %vm130_vm1, %v1491_v18  ;;  %2403 = vmatpush.msk.msrb.mxu3 %vm130_vm1, %v1492_v19  ;;  %v1367_v10 = vpop.f32.mrf.mxu0 }
 0x3f4   :  { %v1615_v14 = vpop.permute.xlu0 %1614 }
 0x3f5   :  { %v1618_v26 = vsel %vm105_vm6, %v1615_v14, %v1617_v29  ;;  %v1619_v27 = vsel %vm105_vm6, %v1617_v29, %v1615_v14  ;;  %v1550_v33 = vpop.permute.xlu1 %1549 }
 0x3f6   :  { %v1620_v28 = vsel %vm2650_vm10, %v1618_v26, %v1613_v25  ;;  %v1621_v30 = vsel %vm2638_vm7, %v1619_v27, %v1612_v15  ;;  %v1553_v39 = vsel %vm105_vm6, %v1550_v33, %v1552_v35  ;;  %v1554_v40 = vsel %vm105_vm6, %v1552_v35, %v1550_v33 }
 0x3f7   :  { %2410 = vmatpush.msk.msra.mxu2 %vm130_vm1, %v1620_v28  ;;  %2412 = vmatpush.msk.msra.mxu3 %vm130_vm1, %v1621_v30  ;;  %v1826_v48 = vsel %vm2646_vm9, %v1613_v25, %v1618_v26  ;;  %v1827_v54 = vsel %vm2642_vm8, %v1612_v15, %v1619_v27 }
 0x3f8   :  { %2402 = vmatmul.msk.f32.vlgmr.msrb.gmra.mxu2 %vm126_vm4, %v2396_v5  ;;  %2404 = vmatmul.msk.f32.vlgmr.msrb.gmra.mxu3 %vm126_vm4, %v2396_v5 }
 0x3f9   :  { %2419 = vmatpush.msk.msrb.mxu2 %vm130_vm1, %v2874_v23  ;;  %2421 = vmatpush.msk.msrb.mxu3 %vm130_vm1, %v2886_v24  ;;  %v2405_v23 = vld [vmem:[%s3211_s4 + $0xc] sm:$0xf] }
 0x3fc   :  { %v1546_v37 = vpop.permute.xlu0 %1545 }
 0x3fd   :  { %v1547_v43 = vsel %vm98_vm5, %v1544_v20, %v1546_v37  ;;  %v1548_v44 = vsel %vm98_vm5, %v1546_v37, %v1544_v20  ;;  %v1883_v47 = vpop.permute.xlu1 %1882 }
 0x3fe   :  { %v1555_v24 = vsel %vm2650_vm10, %v1553_v39, %v1548_v44  ;;  %v1556_v45 = vsel %vm2638_vm7, %v1554_v40, %v1547_v43  ;;  %v1773_v32 = vsel %vm2646_vm9, %v1548_v44, %v1553_v39  ;;  %v1774_v38 = vsel %vm2642_vm8, %v1547_v43, %v1554_v40 }
 0x3ff   :  { %2406 = vmatpush.msk.msra.mxu0 %vm130_vm1, %v1555_v24  ;;  %2408 = vmatpush.msk.msra.mxu1 %vm130_vm1, %v1556_v45 }
 0x400   :  { %2407 = vmatmul.msk.f32.vlgmr.msra.gmra.mxu0 %vm126_vm4, %v2405_v23  ;;  %2409 = vmatmul.msk.f32.vlgmr.msra.gmra.mxu1 %vm126_vm4, %v2405_v23 }
 0x401   :  { %2411 = vmatmul.msk.f32.vlgmr.msra.gmra.mxu2 %vm126_vm4, %v2405_v23  ;;  %2413 = vmatmul.msk.f32.vlgmr.msra.gmra.mxu3 %vm126_vm4, %v2405_v23 }
 0x402   :  { %2415 = vmatpush.msk.msrb.mxu0 %vm130_vm1, %v2870_v21  ;;  %2417 = vmatpush.msk.msrb.mxu1 %vm130_vm1, %v2872_v22  ;;  %v2414_v21 = vld [vmem:[%s3211_s4 + $0x10] sm:$0xf]  ;;  %v1954_v22 = vpop.permute.xlu2 %1953 }
 0x403   :  { %2428 = vmatpush.msk.msra.mxu2 %vm130_vm1, %v1826_v48  ;;  %2430 = vmatpush.msk.msra.mxu3 %vm130_vm1, %v1827_v54 }
 0x404   :  { %2424 = vmatpush.msk.msra.mxu0 %vm130_vm1, %v1773_v32  ;;  %2426 = vmatpush.msk.msra.mxu1 %vm130_vm1, %v1774_v38  ;;  %v1948_v55 = vpop.permute.xlu0 %1947 }
 0x405   :  { %v1950_v56 = vpop.permute.xlu1 %1949 }
 0x406   :  { %v1951_v58 = vsel %vm98_vm5, %v1948_v55, %v1950_v56  ;;  %v1952_v59 = vsel %vm98_vm5, %v1950_v56, %v1948_v55 }
 0x408   :  { %2416 = vmatmul.msk.f32.vlgmr.msrb.gmra.mxu0 %vm126_vm4, %v2414_v21  ;;  %2418 = vmatmul.msk.f32.vlgmr.msrb.gmra.mxu1 %vm126_vm4, %v2414_v21 }
 0x409   :  { %2420 = vmatmul.msk.f32.vlgmr.msrb.gmra.mxu2 %vm126_vm4, %v2414_v21  ;;  %2422 = vmatmul.msk.f32.vlgmr.msrb.gmra.mxu3 %vm126_vm4, %v2414_v21 }
 0x40a   :  { %v1885_v2 = vpop.permute.xlu2 %1884 }
 0x40b   :  { %v1886_v6 = vsel %vm98_vm5, %v1883_v47, %v1885_v2  ;;  %v1887_v7 = vsel %vm98_vm5, %v1885_v2, %v1883_v47 }
 0x40c   :  { %v1956_v57 = vpop.permute.xlu0 %1955 }
 0x40d   :  { %v1957_v60 = vsel %vm105_vm6, %v1954_v22, %v1956_v57  ;;  %v1958_v61 = vsel %vm105_vm6, %v1956_v57, %v1954_v22  ;;  %v1891_v4 = vpop.permute.xlu1 %1890 }
 0x40e   :  { %v1959_v63 = vsel %vm2650_vm10, %v1957_v60, %v1952_v59  ;;  %v1960_v1 = vsel %vm2638_vm7, %v1958_v61, %v1951_v58  ;;  %v2165_v17 = vsel %vm2646_vm9, %v1952_v59, %v1957_v60  ;;  %v2166_v52 = vsel %vm2642_vm8, %v1951_v58, %v1958_v61 }
 0x40f   :  { %2437 = vmatpush.msk.msrb.mxu2 %vm130_vm1, %v1959_v63  ;;  %2439 = vmatpush.msk.msrb.mxu3 %vm130_vm1, %v1960_v1 }
 0x410   :  { %2425 = vmatmul.msk.f32.vlgmr.msra.gmra.mxu0 %vm126_vm4, %v2423_v62  ;;  %2427 = vmatmul.msk.f32.vlgmr.msra.gmra.mxu1 %vm126_vm4, %v2423_v62 }
 0x411   :  { %2429 = vmatmul.msk.f32.vlgmr.msra.gmra.mxu2 %vm126_vm4, %v2423_v62  ;;  %2431 = vmatmul.msk.f32.vlgmr.msra.gmra.mxu3 %vm126_vm4, %v2423_v62 }
 0x412   :  { %2446 = vmatpush.msk.msra.mxu2 %vm130_vm1, %v2919_v46  ;;  %2448 = vmatpush.msk.msra.mxu3 %vm130_vm1, %v2950_v53  ;;  %v2432_v46 = vld [vmem:[%s3211_s4 + $0x18] sm:$0xf] }
 0x414   :  { %v1889_v5 = vpop.permute.xlu0 %1888 }
 0x415   :  { %v1892_v8 = vsel %vm105_vm6, %v1889_v5, %v1891_v4  ;;  %v1893_v36 = vsel %vm105_vm6, %v1891_v4, %v1889_v5 }
 0x416   :  { %v1894_v53 = vsel %vm2650_vm10, %v1892_v8, %v1887_v7  ;;  %v1895_v42 = vsel %vm2638_vm7, %v1893_v36, %v1886_v6  ;;  %v2112_v49 = vsel %vm2646_vm9, %v1887_v7, %v1892_v8  ;;  %v2113_v9 = vsel %vm2642_vm8, %v1886_v6, %v1893_v36 }
 0x417   :  { %2433 = vmatpush.msk.msrb.mxu0 %vm130_vm1, %v1894_v53  ;;  %2435 = vmatpush.msk.msrb.mxu1 %vm130_vm1, %v1895_v42 }
 0x418   :  { %2434 = vmatmul.msk.f32.vlgmr.msrb.gmra.mxu0 %vm126_vm4, %v2432_v46  ;;  %2436 = vmatmul.msk.f32.vlgmr.msrb.gmra.mxu1 %vm126_vm4, %v2432_v46 }
 0x419   :  { %2438 = vmatmul.msk.f32.vlgmr.msrb.gmra.mxu2 %vm126_vm4, %v2432_v46  ;;  %2440 = vmatmul.msk.f32.vlgmr.msrb.gmra.mxu3 %vm126_vm4, %v2432_v46 }
 0x41a   :  { %2442 = vmatpush.msk.msra.mxu0 %vm130_vm1, %v2903_v34  ;;  %2444 = vmatpush.msk.msra.mxu1 %vm130_vm1, %v2962_v31  ;;  %v2441_v34 = vld [vmem:[%s3211_s4 + $0x1c] sm:$0xf]  ;;  %v1292_v31 = vpop.f32.mrf.mxu1 }
 0x41b   :  { %2455 = vmatpush.msk.msrb.mxu2 %vm130_vm1, %v2165_v17  ;;  %2457 = vmatpush.msk.msrb.mxu3 %vm130_vm1, %v2166_v52 }
 0x41c   :  { %2451 = vmatpush.msk.msrb.mxu0 %vm130_vm1, %v2112_v49  ;;  %2453 = vmatpush.msk.msrb.mxu1 %vm130_vm1, %v2113_v9 }
 0x420   :  { %2443 = vmatmul.msk.f32.vlgmr.msra.gmra.mxu0 %vm126_vm4, %v2441_v34  ;;  %2445 = vmatmul.msk.f32.vlgmr.msra.gmra.mxu1 %vm126_vm4, %v2441_v34 }
 0x421   :  { %2447 = vmatmul.msk.f32.vlgmr.msra.gmra.mxu2 %vm126_vm4, %v2441_v34  ;;  %2449 = vmatmul.msk.f32.vlgmr.msra.gmra.mxu3 %vm126_vm4, %v2441_v34 }
 0x422   :  { %v1387_v11 = vpop.f32.mrf.mxu1 }
 0x428   :  { %2452 = vmatmul.msk.f32.vlgmr.msrb.gmra.mxu0 %vm126_vm4, %v2450_v50  ;;  %2454 = vmatmul.msk.f32.vlgmr.msrb.gmra.mxu1 %vm126_vm4, %v2450_v50 }
 0x429   :  { %2456 = vmatmul.msk.f32.vlgmr.msrb.gmra.mxu2 %vm126_vm4, %v2450_v50  ;;  %2458 = vmatmul.msk.f32.vlgmr.msrb.gmra.mxu3 %vm126_vm4, %v2450_v50 }
 0x458   :  { %v1466_v16 = vpop.f32.mrf.mxu0  ;;  %v1486_v18 = vpop.f32.mrf.mxu1 }
 0x45d   :  { %v1321_v12 = vpop.f32.mrf.mxu2  ;;  %v1341_v13 = vpop.f32.mrf.mxu3 }
 0x45e   :  { %v1322_v23 = vadd.f32 %v1321_v12, %v1272_v51  ;;  %v1342_v24 = vadd.f32 %v1341_v13, %v1292_v31 }
 0x460   :  { %v1489_v45 = vadd.f32 %v1466_v16, %v1322_v23  ;;  %v1490_v47 = vadd.f32 %v1486_v18, %v1342_v24 }
 0x473   :  { %v1413_v29 = vpop.f32.mrf.mxu2  ;;  %v1433_v41 = vpop.f32.mrf.mxu3 }
 0x474   :  { %v1414_v57 = vadd.f32 %v1413_v29, %v1367_v10  ;;  %v1434_v58 = vadd.f32 %v1433_v41, %v1387_v11 }
 0x47b   :  { %v1516_v19 = vpop.f32.mrf.mxu2  ;;  %v1536_v20 = vpop.f32.mrf.mxu3 }
 0x47c   :  { %v1539_v61 = vadd.f32 %v1516_v19, %v1414_v57  ;;  %v1540_v62 = vadd.f32 %v1536_v20, %v1434_v58  ;;  %v2245_v57 = vld [vmem:[%s3212_s5] sm:$0xf] }
 0x47d   :  { %v1583_v14 = vpop.f32.mrf.mxu0  ;;  %v1603_v15 = vpop.f32.mrf.mxu1 }
 0x47e   :  { %v1606_v48 = vadd.f32 %v1583_v14, %v1489_v45  ;;  %v1607_v54 = vadd.f32 %v1603_v15, %v1490_v47 }
 0x484   :  { %v1645_v25 = vpop.f32.mrf.mxu2  ;;  %v1665_v26 = vpop.f32.mrf.mxu3 }
 0x485   :  { %v1698_v27 = vpop.f32.mrf.mxu0  ;;  %v1718_v28 = vpop.f32.mrf.mxu1  ;;  %v1668_v2 = vadd.f32 %v1645_v25, %v1539_v61  ;;  %v1669_v4 = vadd.f32 %v1665_v26, %v1540_v62  ;;  %v2258_v61 = vld [vmem:[%s3213_s6] sm:$0xf] }
 0x486   :  { %v1721_v22 = vadd.f32 %v1698_v27, %v1606_v48  ;;  %v1722_v56 = vadd.f32 %v1718_v28, %v1607_v54 }
 0x48c   :  { %v1746_v30 = vpop.f32.mrf.mxu2  ;;  %v1766_v33 = vpop.f32.mrf.mxu3 }
 0x48d   :  { %v1801_v35 = vpop.f32.mrf.mxu0  ;;  %v1821_v37 = vpop.f32.mrf.mxu1  ;;  %v1769_v36 = vadd.f32 %v1746_v30, %v1668_v2  ;;  %v1770_v46 = vadd.f32 %v1766_v33, %v1669_v4 }
 0x48e   :  { %v1824_v59 = vadd.f32 %v1801_v35, %v1721_v22  ;;  %v1825_v60 = vadd.f32 %v1821_v37, %v1722_v56 }
 0x494   :  { %v1851_v39 = vpop.f32.mrf.mxu2  ;;  %v1871_v40 = vpop.f32.mrf.mxu3 }
 0x495   :  { %v1922_v43 = vpop.f32.mrf.mxu0  ;;  %v1942_v44 = vpop.f32.mrf.mxu1  ;;  %v1874_v49 = vadd.f32 %v1851_v39, %v1769_v36  ;;  %v1875_v9 = vadd.f32 %v1871_v40, %v1770_v46 }
 0x496   :  { %v1945_v63 = vadd.f32 %v1922_v43, %v1824_v59  ;;  %v1946_v1 = vadd.f32 %v1942_v44, %v1825_v60 }
 0x49c   :  { %v1984_v32 = vpop.f32.mrf.mxu2  ;;  %v2004_v38 = vpop.f32.mrf.mxu3 }
 0x49d   :  { %v2037_v55 = vpop.f32.mrf.mxu0  ;;  %v2057_v21 = vpop.f32.mrf.mxu1  ;;  %v2007_v10 = vadd.f32 %v1984_v32, %v1874_v49  ;;  %v2008_v11 = vadd.f32 %v2004_v38, %v1875_v9 }
 0x49e   :  { %v2060_v5 = vadd.f32 %v2037_v55, %v1945_v63  ;;  %v2061_v6 = vadd.f32 %v2057_v21, %v1946_v1 }
 0x4a4   :  { %v2085_v7 = vpop.f32.mrf.mxu2  ;;  %v2105_v8 = vpop.f32.mrf.mxu3 }
 0x4a5   :  { %v2140_v53 = vpop.f32.mrf.mxu0  ;;  %v2160_v42 = vpop.f32.mrf.mxu1  ;;  %v2108_v41 = vadd.f32 %v2085_v7, %v2007_v10  ;;  %v2109_v16 = vadd.f32 %v2105_v8, %v2008_v11 }
 0x4a6   :  { %v3171_v17 = vadd.f32 %v2140_v53, %v2060_v5  ;;  %v3173_v52 = vadd.f32 %v2160_v42, %v2061_v6 }
 0x4a8   :  { %v2215_v34 = vsel %vm130_vm1, %v3171_v17, 0.0  ;;  %v2216_v50 = vsel %vm130_vm1, %v3173_v52, 0.0  ;;  %v2220_v51 = vmul.f32 %v3171_v17, %v3171_v17  ;;  %v2221_v31 = vmul.f32 %v3173_v52, %v3173_v52 }
 0x4a9   :  { %v2217_v12 = vadd.f32 %v2216_v50, %v2215_v34 }
 0x4aa   :  { %v2222_v13 = vsel %vm130_vm1, %v2220_v51, 0.0  ;;  %v2223_v29 = vsel %vm130_vm1, %v2221_v31, 0.0 }
 0x4ab   :  { %2218 = vadd.xlane.f32.xlu2 %v2217_v12  ;;  %v2224_v18 = vadd.f32 %v2223_v29, %v2222_v13 }
 0x4ac   :  { %v2190_v19 = vpop.f32.mrf.mxu2  ;;  %v2210_v20 = vpop.f32.mrf.mxu3 }
 0x4ad   :  { %v2213_v14 = vadd.f32 %v2190_v19, %v2108_v41  ;;  %v2214_v15 = vadd.f32 %v2210_v20, %v2109_v16  ;;  %2225 = vadd.xlane.f32.xlu1 %v2224_v18 }
 0x4af   :  { %v2227_v25 = vsel %vm130_vm1, %v2213_v14, 0.0  ;;  %v2228_v26 = vsel %vm130_vm1, %v2214_v15, 0.0  ;;  %v2233_v27 = vmul.f32 %v2213_v14, %v2213_v14  ;;  %v2234_v28 = vmul.f32 %v2214_v15, %v2214_v15 }
 0x4b0   :  { %v2229_v30 = vadd.f32 %v2228_v26, %v2227_v25 }
 0x4b1   :  { %v2235_v33 = vsel %vm130_vm1, %v2233_v27, 0.0  ;;  %v2236_v35 = vsel %vm130_vm1, %v2234_v28, 0.0 }
 0x4b2   :  { %2230 = vadd.xlane.f32.xlu0 %v2229_v30  ;;  %v2237_v37 = vadd.f32 %v2236_v35, %v2235_v33 }
 0x4b4   :  { %2238 = vadd.xlane.f32.xlu2 %v2237_v37 }
 0x51e   :  { %v2219_v39 = vpop.xlane.xlu2 %2218 }
 0x520   :  { %v2226_v44 = vpop.xlane.xlu1 %2225 }
 0x525   :  { %v2231_v40 = vpop.xlane.xlu0 %2230 }
 0x526   :  { %v2232_v43 = vadd.f32 %v2231_v40, %v2219_v39 }
 0x527   :  { %v2239_v23 = vpop.xlane.xlu2 %2238 }
 0x528   :  { %v2241_v24 = vmul.f32 0.001953125, %v2232_v43  ;;  %v2240_v45 = vadd.f32 %v2239_v23, %v2226_v44 }
 0x52a   :  { %v2243_v47 = vmul.f32 %v2241_v24, %v2241_v24  ;;  %v2242_v48 = vmul.f32 0.001953125, %v2240_v45 }
 0x52c   :  { %v2244_v54 = vsub.f32 %v2242_v48, %v2243_v47 }
 0x52e   :  { %v2246_v32 = vadd.f32 1e-05, %v2244_v54 }
 0x530   :  { %2470 = vrsqrt.f32 %v2246_v32  ;;  %vm2253_vm15 = vweird.f32 %v2246_v32 }
 0x536   :  { %v2471_v38 = vpop.eup %2470 }
 0x537   :  { %v2248_v55 = vmul.f32 %v2471_v38, %v2246_v32  ;;  %vm2254_vm14 = vweird.f32 %v2471_v38 }
 0x538   :  { %vm2255_vm0 = vmor %vm2253_vm15, %vm2254_vm14 }
 0x539   :  { %v2249_v21 = vmul.f32 %v2471_v38, %v2248_v55 }
 0x53b   :  { %v2250_v22 = vmul.f32 0.5, %v2249_v21 }
 0x53d   :  { %v2251_v56 = vsub.f32 1.5, %v2250_v22 }
 0x53f   :  { %v2252_v58 = vmul.f32 %v2471_v38, %v2251_v56 }
 0x541   :  { %v2256_v59 = vsel %vm2255_vm0, %v2471_v38, %v2252_v58 }
 0x542   :  { %v2257_v60 = vmul.f32 %v2256_v59, %v2245_v57 }
 0x544   :  { %2263 = vperm.xlu0 %2466, %v2257_v60   ;;  %v2259_v62 = vmul.f32 %v2257_v60, %v2241_v24 }
 0x546   :  { %v2260_v63 = vsub.f32 %v2258_v61, %v2259_v62 }
 0x548   :  { %2270 = vperm.xlu1 %2467, %v2260_v63  }
 0x5b6   :  { %v2264_v1 = vpop.permute.xlu0 %2263 }
 0x5b7   :  { %v2267_v2 = vmul.f32 %v2264_v1, %v3173_v52  ;;  %v2276_v4 = vmul.f32 %v2264_v1, %v2214_v15  ;;  %v2266_v6 = vmul.f32 %v2264_v1, %v3171_v17  ;;  %v2275_v7 = vmul.f32 %v2264_v1, %v2213_v14 }
 0x5ba   :  { %v2271_v5 = vpop.permute.xlu1 %2270 }
 0x5bb   :  { %v2274_v8 = vadd.f32 %v2271_v5, %v2267_v2  ;;  %v2278_v36 = vadd.f32 %v2276_v4, %v2271_v5  ;;  %v2273_v46 = vadd.f32 %v2271_v5, %v2266_v6  ;;  %v2277_v53 = vadd.f32 %v2275_v7, %v2271_v5 }
 0x5bd   :  { %v2281_v42 = vrot.slane %v2274_v8, 4  ;;  %v2288_v49 = vrot.slane %v2278_v36, 4 }
 0x5bf   :  { %v2282_v9 = vsel %vm130_vm1, %v2273_v46, %v2281_v42  ;;  %v2289_v34 = vsel %vm130_vm1, %v2277_v53, %v2288_v49 }
 0x5c0   :  { %v2284_v50 = vadd.f32 %v2282_v9, %v2520_v0  ;;  %v2291_v51 = vadd.f32 %v2528_v3, %v2289_v34 }
 0x5c2   :  { %2285 = vst [vmem:[%s3214_s7] sm:$0xff] %v2284_v50 }
 0x5c3   :  { %2459 = vst [vmem:[%s3214_s7 + $0x8] sm:$0xff] %v2291_v51 }

</bundles_post_ra>
